<compile_context>
chip_gen: v5e
topology: v5e:2x2
jax: 0.10.0
libtpu: 0.0.40
codegen_flags: <defaults>
</compile_context>

<pallas_src>
import numpy as np
import jax
import jax.numpy as jnp
from jax import lax
from jax.experimental import pallas as pl
from jax.experimental.pallas import tpu as pltpu

EPS = 1e-5  # BatchNorm2d default eps


# ---------- pass 1: conv1 (1x1) + shortcut conv (1x1, stride 2) + partial BN stats ----------
def conv1_shortcut_kernel(x_ref, xsc_ref, w1_ref, wsc_ref,
                          y1_ref, st1_ref, ysc_ref, stsc_ref):
    x = x_ref[0]                                                          # (H*W, Cin)
    y1 = jnp.dot(x, w1_ref[...], preferred_element_type=jnp.float32)     # (H*W, C)
    st1_ref[0] = jnp.concatenate(
        [jnp.sum(y1, axis=0, keepdims=True),
         jnp.sum(y1 * y1, axis=0, keepdims=True)], axis=0)                # (2, C)
    y1_ref[0] = y1

    xs = xsc_ref[0]                                                       # (Ho*Wo, Cin)
    ysc = jnp.dot(xs, wsc_ref[...], preferred_element_type=jnp.float32)   # (Ho*Wo, C)
    stsc_ref[0] = jnp.concatenate(
        [jnp.sum(ysc, axis=0, keepdims=True),
         jnp.sum(ysc * ysc, axis=0, keepdims=True)], axis=0)
    ysc_ref[0] = ysc


# ---------- pass 2: BN1 + ReLU + conv2 (3x3, stride 2, pad 1) + partial BN2 stats ----------
def bn1_relu_conv2_kernel(y1_ref, a1_ref, b1_ref, w2_ref, y2_ref, st2_ref):
    H, W, C = y1_ref.shape[1], y1_ref.shape[2], y1_ref.shape[3]
    Ho, Wo = H // 2, W // 2

    h = jnp.maximum(y1_ref[0] * a1_ref[...] + b1_ref[...], 0.0)          # (H, W, C), deinterleaved
    # zero padding for the conv: in the parity-deinterleaved order produced by the wrapper
    # (odd indices first, then even), the "-1" row/col simply sits at the front.
    h = jnp.concatenate([jnp.zeros((1, W, C), jnp.float32), h], axis=0)  # (H+1, W, C)
    h = jnp.concatenate([jnp.zeros((H + 1, 1, C), jnp.float32), h], axis=1)  # (H+1, W+1, C)

    # deinterleaved start offsets for taps k = 0,1,2  (original index = 2*out - 1 + k)
    rs = (0, 1 + Ho, 1)
    cs = (0, 1 + Wo, 1)
    taps = []
    for kh in range(3):
        for kw in range(3):
            v = h[rs[kh]:rs[kh] + Ho, cs[kw]:cs[kw] + Wo, :]              # (Ho, Wo, C)
            taps.append(v.reshape(Ho * Wo, C))
    patch = jnp.concatenate(taps, axis=1)                                 # (Ho*Wo, 9C) im2col
    y2 = jnp.dot(patch, w2_ref[...], preferred_element_type=jnp.float32)  # (Ho*Wo, C)

    st2_ref[0] = jnp.concatenate(
        [jnp.sum(y2, axis=0, keepdims=True),
         jnp.sum(y2 * y2, axis=0, keepdims=True)], axis=0)
    y2_ref[0] = y2


# ---------- pass 3: BN2 + ReLU + conv3 (1x1) + partial BN3 stats ----------
def bn2_relu_conv3_kernel(y2_ref, a2_ref, b2_ref, w3_ref, y3_ref, st3_ref):
    z = jnp.maximum(y2_ref[0] * a2_ref[...] + b2_ref[...], 0.0)           # (Np, C)
    y3 = jnp.dot(z, w3_ref[...], preferred_element_type=jnp.float32)      # (Np, C)
    st3_ref[0] = jnp.concatenate(
        [jnp.sum(y3, axis=0, keepdims=True),
         jnp.sum(y3 * y3, axis=0, keepdims=True)], axis=0)
    y3_ref[0] = y3


# ---------- pass 4: BN3 + shortcut BN + add + ReLU ----------
def bn3_add_relu_kernel(y3_ref, ysc_ref, a3_ref, b3_ref, asc_ref, bsc_ref, out_ref):
    o = (y3_ref[0] * a3_ref[...] + b3_ref[...]
         + ysc_ref[0] * asc_ref[...] + bsc_ref[...])
    out_ref[0] = jnp.maximum(o, 0.0)


def _bn_affine(stats, gamma, beta, count):
    """Single-pass training-mode BN: stats is (N, 2, C) = per-batch-element [sum, sumsq]."""
    s = jnp.sum(stats[:, 0, :], axis=0)
    sq = jnp.sum(stats[:, 1, :], axis=0)
    mean = s / count
    var = jnp.maximum(sq / count - mean * mean, 0.0)      # biased variance, like torch BN
    scale = gamma * lax.rsqrt(var + EPS)
    shift = beta - mean * scale
    return scale.reshape(1, -1), shift.reshape(1, -1)


@jax.jit
def bottleneck_forward(x, params):
    w1, w2, w3, wsc = params["w1"], params["w2"], params["w3"], params["wsc"]
    g1, b1 = params["g1"], params["b1"]
    g2, b2 = params["g2"], params["b2"]
    g3, b3 = params["g3"], params["b3"]
    gsc, bsc = params["gsc"], params["bsc"]

    N, Cin, H, W = x.shape
    C = w1.shape[0]
    assert H % 2 == 0 and W % 2 == 0
    Ho, Wo = H // 2, W // 2
    Np = Ho * Wo

    # ---- device-side layout plumbing (jittable, no host sync) ----
    x_nhwc = jnp.transpose(x, (0, 2, 3, 1)).astype(jnp.float32)           # (N,H,W,Cin)
    # parity-deinterleaved spatial order (odd indices first, then even) so every 3x3/stride-2
    # tap of conv2 becomes a contiguous static slice inside the kernel.
    ph = np.concatenate([np.arange(1, H, 2), np.arange(0, H, 2)])
    pw = np.concatenate([np.arange(1, W, 2), np.arange(0, W, 2)])
    x_pix = x_nhwc[:, ph][:, :, pw].reshape(N, H * W, Cin)                # conv1 input
    x_sc = x_nhwc[:, ::2, ::2, :].reshape(N, Np, Cin)                     # shortcut conv input

    w1m = w1.reshape(C, Cin).T.astype(jnp.float32)                        # (Cin, C)
    wscm = wsc.reshape(C, Cin).T.astype(jnp.float32)                      # (Cin, C)
    w3m = w3.reshape(C, C).T.astype(jnp.float32)                          # (C,  C)
    w2m = jnp.transpose(w2, (2, 3, 1, 0)).reshape(9 * C, C).astype(jnp.float32)  # (9C, C)

    par = pltpu.CompilerParams(dimension_semantics=("parallel",))

    # ---- pass 1 ----
    y1, st1, ysc, stsc = pl.pallas_call(
        conv1_shortcut_kernel,
        grid=(N,),
        in_specs=[
            pl.BlockSpec((1, H * W, Cin), lambda n: (n, 0, 0)),
            pl.BlockSpec((1, Np, Cin), lambda n: (n, 0, 0)),
            pl.BlockSpec((Cin, C), lambda n: (0, 0)),
            pl.BlockSpec((Cin, C), lambda n: (0, 0)),
        ],
        out_shape=(
            jax.ShapeDtypeStruct((N, H * W, C), jnp.float32),
            jax.ShapeDtypeStruct((N, 2, C), jnp.float32),
            jax.ShapeDtypeStruct((N, Np, C), jnp.float32),
            jax.ShapeDtypeStruct((N, 2, C), jnp.float32),
        ),
        out_specs=(
            pl.BlockSpec((1, H * W, C), lambda n: (n, 0, 0)),
            pl.BlockSpec((1, 2, C), lambda n: (n, 0, 0)),
            pl.BlockSpec((1, Np, C), lambda n: (n, 0, 0)),
            pl.BlockSpec((1, 2, C), lambda n: (n, 0, 0)),
        ),
        compiler_params=par,
    )(x_pix, x_sc, w1m, wscm)

    a1, c1 = _bn_affine(st1, g1, b1, float(N * H * W))
    asc, csc = _bn_affine(stsc, gsc, bsc, float(N * Np))
    y1_4d = y1.reshape(N, H, W, C)                     # free metadata reshape in HBM

    # ---- pass 2 ----
    y2, st2 = pl.pallas_call(
        bn1_relu_conv2_kernel,
        grid=(N,),
        in_specs=[
            pl.BlockSpec((1, H, W, C), lambda n: (n, 0, 0, 0)),
            pl.BlockSpec((1, C), lambda n: (0, 0)),
            pl.BlockSpec((1, C), lambda n: (0, 0)),
            pl.BlockSpec((9 * C, C), lambda n: (0, 0)),
        ],
        out_shape=(
            jax.ShapeDtypeStruct((N, Np, C), jnp.float32),
            jax.ShapeDtypeStruct((N, 2, C), jnp.float32),
        ),
        out_specs=(
            pl.BlockSpec((1, Np, C), lambda n: (n, 0, 0)),
            pl.BlockSpec((1, 2, C), lambda n: (n, 0, 0)),
        ),
        compiler_params=par,
    )(y1_4d, a1, c1, w2m)

    a2, c2 = _bn_affine(st2, g2, b2, float(N * Np))

    # ---- pass 3 ----
    y3, st3 = pl.pallas_call(
        bn2_relu_conv3_kernel,
        grid=(N,),
        in_specs=[
            pl.BlockSpec((1, Np, C), lambda n: (n, 0, 0)),
            pl.BlockSpec((1, C), lambda n: (0, 0)),
            pl.BlockSpec((1, C), lambda n: (0, 0)),
            pl.BlockSpec((C, C), lambda n: (0, 0)),
        ],
        out_shape=(
            jax.ShapeDtypeStruct((N, Np, C), jnp.float32),
            jax.ShapeDtypeStruct((N, 2, C), jnp.float32),
        ),
        out_specs=(
            pl.BlockSpec((1, Np, C), lambda n: (n, 0, 0)),
            pl.BlockSpec((1, 2, C), lambda n: (n, 0, 0)),
        ),
        compiler_params=par,
    )(y2, a2, c2, w3m)

    a3, c3 = _bn_affine(st3, g3, b3, float(N * Np))

    # ---- pass 4 ----
    out = pl.pallas_call(
        bn3_add_relu_kernel,
        grid=(N,),
        in_specs=[
            pl.BlockSpec((1, Np, C), lambda n: (n, 0, 0)),
            pl.BlockSpec((1, Np, C), lambda n: (n, 0, 0)),
            pl.BlockSpec((1, C), lambda n: (0, 0)),
            pl.BlockSpec((1, C), lambda n: (0, 0)),
            pl.BlockSpec((1, C), lambda n: (0, 0)),
            pl.BlockSpec((1, C), lambda n: (0, 0)),
        ],
        out_shape=jax.ShapeDtypeStruct((N, Np, C), jnp.float32),
        out_specs=pl.BlockSpec((1, Np, C), lambda n: (n, 0, 0)),
        compiler_params=par,
    )(y3, ysc, a3, c3, asc, csc)

    # TODO(synk): only the projection-shortcut configuration (conv2 stride=stride*2, 1x1
    # shortcut conv) is implemented, matching Bottleneck(in_channels != channels, stride=1).
    return out.reshape(N, Ho, Wo, C).transpose(0, 3, 1, 2)


# ---------------------------- pure-JAX reference ----------------------------
def bottleneck_reference(x, p):
    dn = ("NCHW", "OIHW", "NCHW")

    def bn(o, g, b):
        m = jnp.mean(o, axis=(0, 2, 3), keepdims=True)
        v = jnp.mean((o - m) ** 2, axis=(0, 2, 3), keepdims=True)
        return (o - m) * lax.rsqrt(v + EPS) * g.reshape(1, -1, 1, 1) + b.reshape(1, -1, 1, 1)

    o = lax.conv_general_dilated(x, p["w1"], (1, 1), ((0, 0), (0, 0)), dimension_numbers=dn)
    o = jnp.maximum(bn(o, p["g1"], p["b1"]), 0.0)
    o = lax.conv_general_dilated(o, p["w2"], (2, 2), ((1, 1), (1, 1)), dimension_numbers=dn)
    o = jnp.maximum(bn(o, p["g2"], p["b2"]), 0.0)
    o = lax.conv_general_dilated(o, p["w3"], (1, 1), ((0, 0), (0, 0)), dimension_numbers=dn)
    o = bn(o, p["g3"], p["b3"])
    sc = lax.conv_general_dilated(x, p["wsc"], (2, 2), ((0, 0), (0, 0)), dimension_numbers=dn)
    sc = bn(sc, p["gsc"], p["bsc"])
    return jnp.maximum(o + sc, 0.0)


if __name__ == "__main__":
    N, Cin, C, H, W = 2, 4, 8, 16, 16   # Bottleneck(in_channels=4, channels=8, stride=1)
    key = jax.random.PRNGKey(0)
    ks = jax.random.split(key, 13)
    x = jax.random.normal(ks[0], (N, Cin, H, W), jnp.float32)
    params = {
        "w1": 0.1 * jax.random.normal(ks[1], (C, Cin, 1, 1), jnp.float32),
        "w2": 0.1 * jax.random.normal(ks[2], (C, C, 3, 3), jnp.float32),
        "w3": 0.1 * jax.random.normal(ks[3], (C, C, 1, 1), jnp.float32),
        "wsc": 0.1 * jax.random.normal(ks[4], (C, Cin, 1, 1), jnp.float32),
        "g1": 1.0 + 0.1 * jax.random.normal(ks[5], (C,), jnp.float32),
        "b1": 0.1 * jax.random.normal(ks[6], (C,), jnp.float32),
        "g2": 1.0 + 0.1 * jax.random.normal(ks[7], (C,), jnp.float32),
        "b2": 0.1 * jax.random.normal(ks[8], (C,), jnp.float32),
        "g3": 1.0 + 0.1 * jax.random.normal(ks[9], (C,), jnp.float32),
        "b3": 0.1 * jax.random.normal(ks[10], (C,), jnp.float32),
        "gsc": 1.0 + 0.1 * jax.random.normal(ks[11], (C,), jnp.float32),
        "bsc": 0.1 * jax.random.normal(ks[12], (C,), jnp.float32),
    }

    out = jax.block_until_ready(bottleneck_forward(x, params))
    ref = jax.block_until_ready(bottleneck_reference(x, params))

    assert out.shape == ref.shape == (N, C, H // 2, W // 2), (out.shape, ref.shape)
    err = float(jnp.max(jnp.abs(out - ref)))
    assert np.allclose(np.asarray(out), np.asarray(ref), atol=1e-2, rtol=1e-2), err
    print("KERNEL_OK")
</pallas_src>

<mosaic_0001>
module attributes {stable_mosaic.version = 11 : i64} {
  func.func @conv1_shortcut_kernel(%arg0: i32, %arg1: memref<1x256x4xf32, #tpu.memory_space<vmem>>, %arg2: memref<1x64x4xf32, #tpu.memory_space<vmem>>, %arg3: memref<4x8xf32, #tpu.memory_space<vmem>>, %arg4: memref<4x8xf32, #tpu.memory_space<vmem>>, %arg5: memref<1x256x8xf32, #tpu.memory_space<vmem>>, %arg6: memref<1x2x8xf32, #tpu.memory_space<vmem>>, %arg7: memref<1x64x8xf32, #tpu.memory_space<vmem>>, %arg8: memref<1x2x8xf32, #tpu.memory_space<vmem>>) attributes {dimension_semantics = [#tpu.dimension_semantics<parallel>], iteration_bounds = array<i64: 2>, scalar_prefetch = 0 : i64, scratch_operands = 0 : i64, tpu.core_type = #tpu.core_type<tc>, window_params = [{transform_indices = @transform_0, window_bounds = array<i64: 1, 256, 4>}, {transform_indices = @transform_1, window_bounds = array<i64: 1, 64, 4>}, {pipeline_mode = #tpu.pipeline_mode<synchronous>, transform_indices = @transform_2, window_bounds = array<i64: 4, 8>}, {pipeline_mode = #tpu.pipeline_mode<synchronous>, transform_indices = @transform_3, window_bounds = array<i64: 4, 8>}, {transform_indices = @transform_4, window_bounds = array<i64: 1, 256, 8>}, {transform_indices = @transform_5, window_bounds = array<i64: 1, 2, 8>}, {transform_indices = @transform_6, window_bounds = array<i64: 1, 64, 8>}, {transform_indices = @transform_7, window_bounds = array<i64: 1, 2, 8>}]} {
    %c0 = arith.constant 0 : index
    %c0_0 = arith.constant 0 : index
    %c0_1 = arith.constant 0 : index
    %0 = vector.load %arg1[%c0, %c0_0, %c0_1] : memref<1x256x4xf32, #tpu.memory_space<vmem>>, vector<1x256x4xf32>
    %1 = vector.shape_cast %0 : vector<1x256x4xf32> to vector<256x4xf32>
    %c0_2 = arith.constant 0 : index
    %c0_3 = arith.constant 0 : index
    %2 = vector.load %arg3[%c0_2, %c0_3] : memref<4x8xf32, #tpu.memory_space<vmem>>, vector<4x8xf32>
    %cst = arith.constant dense<0.000000e+00> : vector<256x8xf32>
    %3 = tpu.matmul %1, %2, %cst {dimension_numbers = #tpu.dot_dimension_numbers<[1], [0], [0], [1], [0, 0, 1, 1], [], []>} : vector<256x4xf32>, vector<4x8xf32>, vector<256x8xf32> -> vector<256x8xf32>
    %cst_4 = arith.constant dense<0.000000e+00> : vector<8xf32>
    %4 = vector.multi_reduction <add>, %3, %cst_4 [0] : vector<256x8xf32> to vector<8xf32>
    %5 = vector.shape_cast %4 : vector<8xf32> to vector<1x8xf32>
    %6 = arith.mulf %3, %3 : vector<256x8xf32>
    %cst_5 = arith.constant dense<0.000000e+00> : vector<8xf32>
    %7 = vector.multi_reduction <add>, %6, %cst_5 [0] : vector<256x8xf32> to vector<8xf32>
    %8 = vector.shape_cast %7 : vector<8xf32> to vector<1x8xf32>
    %9 = tpu.concatenate %5, %8 in 0 : vector<1x8xf32>, vector<1x8xf32> -> vector<2x8xf32>
    %c0_6 = arith.constant 0 : index
    %c0_7 = arith.constant 0 : index
    %c0_8 = arith.constant 0 : index
    %10 = vector.load %arg6[%c0_6, %c0_7, %c0_8] : memref<1x2x8xf32, #tpu.memory_space<vmem>>, vector<1x2x8xf32>
    %11 = vector.shape_cast %10 : vector<1x2x8xf32> to vector<2x8xf32>
    %12 = vector.shape_cast %9 : vector<2x8xf32> to vector<1x2x8xf32>
    tpu.vector_store %arg6[%c0_6, %c0_7, %c0_8], %12 {strides = array<i32>} : memref<1x2x8xf32, #tpu.memory_space<vmem>>, vector<1x2x8xf32>,
    %c0_9 = arith.constant 0 : index
    %c0_10 = arith.constant 0 : index
    %c0_11 = arith.constant 0 : index
    %13 = vector.load %arg5[%c0_9, %c0_10, %c0_11] : memref<1x256x8xf32, #tpu.memory_space<vmem>>, vector<1x256x8xf32>
    %14 = vector.shape_cast %13 : vector<1x256x8xf32> to vector<256x8xf32>
    %15 = vector.shape_cast %3 : vector<256x8xf32> to vector<1x256x8xf32>
    tpu.vector_store %arg5[%c0_9, %c0_10, %c0_11], %15 {strides = array<i32>} : memref<1x256x8xf32, #tpu.memory_space<vmem>>, vector<1x256x8xf32>,
    %c0_12 = arith.constant 0 : index
    %c0_13 = arith.constant 0 : index
    %c0_14 = arith.constant 0 : index
    %16 = vector.load %arg2[%c0_12, %c0_13, %c0_14] : memref<1x64x4xf32, #tpu.memory_space<vmem>>, vector<1x64x4xf32>
    %17 = vector.shape_cast %16 : vector<1x64x4xf32> to vector<64x4xf32>
    %c0_15 = arith.constant 0 : index
    %c0_16 = arith.constant 0 : index
    %18 = vector.load %arg4[%c0_15, %c0_16] : memref<4x8xf32, #tpu.memory_space<vmem>>, vector<4x8xf32>
    %cst_17 = arith.constant dense<0.000000e+00> : vector<64x8xf32>
    %19 = tpu.matmul %17, %18, %cst_17 {dimension_numbers = #tpu.dot_dimension_numbers<[1], [0], [0], [1], [0, 0, 1, 1], [], []>} : vector<64x4xf32>, vector<4x8xf32>, vector<64x8xf32> -> vector<64x8xf32>
    %cst_18 = arith.constant dense<0.000000e+00> : vector<8xf32>
    %20 = vector.multi_reduction <add>, %19, %cst_18 [0] : vector<64x8xf32> to vector<8xf32>
    %21 = vector.shape_cast %20 : vector<8xf32> to vector<1x8xf32>
    %22 = arith.mulf %19, %19 : vector<64x8xf32>
    %cst_19 = arith.constant dense<0.000000e+00> : vector<8xf32>
    %23 = vector.multi_reduction <add>, %22, %cst_19 [0] : vector<64x8xf32> to vector<8xf32>
    %24 = vector.shape_cast %23 : vector<8xf32> to vector<1x8xf32>
    %25 = tpu.concatenate %21, %24 in 0 : vector<1x8xf32>, vector<1x8xf32> -> vector<2x8xf32>
    %c0_20 = arith.constant 0 : index
    %c0_21 = arith.constant 0 : index
    %c0_22 = arith.constant 0 : index
    %26 = vector.load %arg8[%c0_20, %c0_21, %c0_22] : memref<1x2x8xf32, #tpu.memory_space<vmem>>, vector<1x2x8xf32>
    %27 = vector.shape_cast %26 : vector<1x2x8xf32> to vector<2x8xf32>
    %28 = vector.shape_cast %25 : vector<2x8xf32> to vector<1x2x8xf32>
    tpu.vector_store %arg8[%c0_20, %c0_21, %c0_22], %28 {strides = array<i32>} : memref<1x2x8xf32, #tpu.memory_space<vmem>>, vector<1x2x8xf32>,
    %c0_23 = arith.constant 0 : index
    %c0_24 = arith.constant 0 : index
    %c0_25 = arith.constant 0 : index
    %29 = vector.load %arg7[%c0_23, %c0_24, %c0_25] : memref<1x64x8xf32, #tpu.memory_space<vmem>>, vector<1x64x8xf32>
    %30 = vector.shape_cast %29 : vector<1x64x8xf32> to vector<64x8xf32>
    %31 = vector.shape_cast %19 : vector<64x8xf32> to vector<1x64x8xf32>
    tpu.vector_store %arg7[%c0_23, %c0_24, %c0_25], %31 {strides = array<i32>} : memref<1x64x8xf32, #tpu.memory_space<vmem>>, vector<1x64x8xf32>,
    return
  }
  func.func @transform_0(%arg0: i32) -> (i32, i32, i32) {
    %c0_i32 = arith.constant 0 : i32
    %c0_i32_0 = arith.constant 0 : i32
    %c0_i32_1 = arith.constant 0 : i32
    return %arg0, %c0_i32, %c0_i32_0 : i32, i32, i32
  }
  func.func @transform_1(%arg0: i32) -> (i32, i32, i32) {
    %c0_i32 = arith.constant 0 : i32
    %c0_i32_0 = arith.constant 0 : i32
    %c0_i32_1 = arith.constant 0 : i32
    return %arg0, %c0_i32, %c0_i32_0 : i32, i32, i32
  }
  func.func @transform_2(%arg0: i32) -> (i32, i32) {
    %c0_i32 = arith.constant 0 : i32
    %c0_i32_0 = arith.constant 0 : i32
    %c0_i32_1 = arith.constant 0 : i32
    return %c0_i32, %c0_i32_0 : i32, i32
  }
  func.func @transform_3(%arg0: i32) -> (i32, i32) {
    %c0_i32 = arith.constant 0 : i32
    %c0_i32_0 = arith.constant 0 : i32
    %c0_i32_1 = arith.constant 0 : i32
    return %c0_i32, %c0_i32_0 : i32, i32
  }
  func.func @transform_4(%arg0: i32) -> (i32, i32, i32) {
    %c0_i32 = arith.constant 0 : i32
    %c0_i32_0 = arith.constant 0 : i32
    %c0_i32_1 = arith.constant 0 : i32
    return %arg0, %c0_i32, %c0_i32_0 : i32, i32, i32
  }
  func.func @transform_5(%arg0: i32) -> (i32, i32, i32) {
    %c0_i32 = arith.constant 0 : i32
    %c0_i32_0 = arith.constant 0 : i32
    %c0_i32_1 = arith.constant 0 : i32
    return %arg0, %c0_i32, %c0_i32_0 : i32, i32, i32
  }
  func.func @transform_6(%arg0: i32) -> (i32, i32, i32) {
    %c0_i32 = arith.constant 0 : i32
    %c0_i32_0 = arith.constant 0 : i32
    %c0_i32_1 = arith.constant 0 : i32
    return %arg0, %c0_i32, %c0_i32_0 : i32, i32, i32
  }
  func.func @transform_7(%arg0: i32) -> (i32, i32, i32) {
    %c0_i32 = arith.constant 0 : i32
    %c0_i32_0 = arith.constant 0 : i32
    %c0_i32_1 = arith.constant 0 : i32
    return %arg0, %c0_i32, %c0_i32_0 : i32, i32, i32
  }
}

module attributes {stable_mosaic.version = 11 : i64} {
  func.func @bn3_add_relu_kernel(%arg0: i32, %arg1: memref<1x64x8xf32, #tpu.memory_space<vmem>>, %arg2: memref<1x64x8xf32, #tpu.memory_space<vmem>>, %arg3: memref<1x8xf32, #tpu.memory_space<vmem>>, %arg4: memref<1x8xf32, #tpu.memory_space<vmem>>, %arg5: memref<1x8xf32, #tpu.memory_space<vmem>>, %arg6: memref<1x8xf32, #tpu.memory_space<vmem>>, %arg7: memref<1x64x8xf32, #tpu.memory_space<vmem>>) attributes {dimension_semantics = [#tpu.dimension_semantics<parallel>], iteration_bounds = array<i64: 2>, scalar_prefetch = 0 : i64, scratch_operands = 0 : i64, tpu.core_type = #tpu.core_type<tc>, window_params = [{transform_indices = @transform_0, window_bounds = array<i64: 1, 64, 8>}, {transform_indices = @transform_1, window_bounds = array<i64: 1, 64, 8>}, {pipeline_mode = #tpu.pipeline_mode<synchronous>, transform_indices = @transform_2, window_bounds = array<i64: 1, 8>}, {pipeline_mode = #tpu.pipeline_mode<synchronous>, transform_indices = @transform_3, window_bounds = array<i64: 1, 8>}, {pipeline_mode = #tpu.pipeline_mode<synchronous>, transform_indices = @transform_4, window_bounds = array<i64: 1, 8>}, {pipeline_mode = #tpu.pipeline_mode<synchronous>, transform_indices = @transform_5, window_bounds = array<i64: 1, 8>}, {transform_indices = @transform_6, window_bounds = array<i64: 1, 64, 8>}]} {
    %c0 = arith.constant 0 : index
    %c0_0 = arith.constant 0 : index
    %c0_1 = arith.constant 0 : index
    %0 = vector.load %arg1[%c0, %c0_0, %c0_1] : memref<1x64x8xf32, #tpu.memory_space<vmem>>, vector<1x64x8xf32>
    %1 = vector.shape_cast %0 : vector<1x64x8xf32> to vector<64x8xf32>
    %c0_2 = arith.constant 0 : index
    %c0_3 = arith.constant 0 : index
    %2 = vector.load %arg3[%c0_2, %c0_3] : memref<1x8xf32, #tpu.memory_space<vmem>>, vector<1x8xf32>
    %3 = vector.broadcast %2 : vector<1x8xf32> to vector<64x8xf32>
    %4 = arith.mulf %1, %3 : vector<64x8xf32>
    %c0_4 = arith.constant 0 : index
    %c0_5 = arith.constant 0 : index
    %5 = vector.load %arg4[%c0_4, %c0_5] : memref<1x8xf32, #tpu.memory_space<vmem>>, vector<1x8xf32>
    %6 = vector.broadcast %5 : vector<1x8xf32> to vector<64x8xf32>
    %7 = arith.addf %4, %6 : vector<64x8xf32>
    %c0_6 = arith.constant 0 : index
    %c0_7 = arith.constant 0 : index
    %c0_8 = arith.constant 0 : index
    %8 = vector.load %arg2[%c0_6, %c0_7, %c0_8] : memref<1x64x8xf32, #tpu.memory_space<vmem>>, vector<1x64x8xf32>
    %9 = vector.shape_cast %8 : vector<1x64x8xf32> to vector<64x8xf32>
    %c0_9 = arith.constant 0 : index
    %c0_10 = arith.constant 0 : index
    %10 = vector.load %arg5[%c0_9, %c0_10] : memref<1x8xf32, #tpu.memory_space<vmem>>, vector<1x8xf32>
    %11 = vector.broadcast %10 : vector<1x8xf32> to vector<64x8xf32>
    %12 = arith.mulf %9, %11 : vector<64x8xf32>
    %13 = arith.addf %7, %12 : vector<64x8xf32>
    %c0_11 = arith.constant 0 : index
    %c0_12 = arith.constant 0 : index
    %14 = vector.load %arg6[%c0_11, %c0_12] : memref<1x8xf32, #tpu.memory_space<vmem>>, vector<1x8xf32>
    %15 = vector.broadcast %14 : vector<1x8xf32> to vector<64x8xf32>
    %16 = arith.addf %13, %15 : vector<64x8xf32>
    %cst = arith.constant 0.000000e+00 : f32
    %17 = vector.broadcast %cst : f32 to vector<64x8xf32>
    %18 = arith.maximumf %16, %17 : vector<64x8xf32>
    %c0_13 = arith.constant 0 : index
    %c0_14 = arith.constant 0 : index
    %c0_15 = arith.constant 0 : index
    %19 = vector.load %arg7[%c0_13, %c0_14, %c0_15] : memref<1x64x8xf32, #tpu.memory_space<vmem>>, vector<1x64x8xf32>
    %20 = vector.shape_cast %19 : vector<1x64x8xf32> to vector<64x8xf32>
    %21 = vector.shape_cast %18 : vector<64x8xf32> to vector<1x64x8xf32>
    tpu.vector_store %arg7[%c0_13, %c0_14, %c0_15], %21 {strides = array<i32>} : memref<1x64x8xf32, #tpu.memory_space<vmem>>, vector<1x64x8xf32>,
    return
  }
  func.func @transform_0(%arg0: i32) -> (i32, i32, i32) {
    %c0_i32 = arith.constant 0 : i32
    %c0_i32_0 = arith.constant 0 : i32
    %c0_i32_1 = arith.constant 0 : i32
    return %arg0, %c0_i32, %c0_i32_0 : i32, i32, i32
  }
  func.func @transform_1(%arg0: i32) -> (i32, i32, i32) {
    %c0_i32 = arith.constant 0 : i32
    %c0_i32_0 = arith.constant 0 : i32
    %c0_i32_1 = arith.constant 0 : i32
    return %arg0, %c0_i32, %c0_i32_0 : i32, i32, i32
  }
  func.func @transform_2(%arg0: i32) -> (i32, i32) {
    %c0_i32 = arith.constant 0 : i32
    %c0_i32_0 = arith.constant 0 : i32
    %c0_i32_1 = arith.constant 0 : i32
    return %c0_i32, %c0_i32_0 : i32, i32
  }
  func.func @transform_3(%arg0: i32) -> (i32, i32) {
    %c0_i32 = arith.constant 0 : i32
    %c0_i32_0 = arith.constant 0 : i32
    %c0_i32_1 = arith.constant 0 : i32
    return %c0_i32, %c0_i32_0 : i32, i32
  }
  func.func @transform_4(%arg0: i32) -> (i32, i32) {
    %c0_i32 = arith.constant 0 : i32
    %c0_i32_0 = arith.constant 0 : i32
    %c0_i32_1 = arith.constant 0 : i32
    return %c0_i32, %c0_i32_0 : i32, i32
  }
  func.func @transform_5(%arg0: i32) -> (i32, i32) {
    %c0_i32 = arith.constant 0 : i32
    %c0_i32_0 = arith.constant 0 : i32
    %c0_i32_1 = arith.constant 0 : i32
    return %c0_i32, %c0_i32_0 : i32, i32
  }
  func.func @transform_6(%arg0: i32) -> (i32, i32, i32) {
    %c0_i32 = arith.constant 0 : i32
    %c0_i32_0 = arith.constant 0 : i32
    %c0_i32_1 = arith.constant 0 : i32
    return %arg0, %c0_i32, %c0_i32_0 : i32, i32, i32
  }
}

module attributes {stable_mosaic.version = 11 : i64} {
  func.func @bn1_relu_conv2_kernel(%arg0: i32, %arg1: memref<1x16x16x8xf32, #tpu.memory_space<vmem>>, %arg2: memref<1x8xf32, #tpu.memory_space<vmem>>, %arg3: memref<1x8xf32, #tpu.memory_space<vmem>>, %arg4: memref<72x8xf32, #tpu.memory_space<vmem>>, %arg5: memref<1x64x8xf32, #tpu.memory_space<vmem>>, %arg6: memref<1x2x8xf32, #tpu.memory_space<vmem>>) attributes {dimension_semantics = [#tpu.dimension_semantics<parallel>], iteration_bounds = array<i64: 2>, scalar_prefetch = 0 : i64, scratch_operands = 0 : i64, tpu.core_type = #tpu.core_type<tc>, window_params = [{transform_indices = @transform_0, window_bounds = array<i64: 1, 16, 16, 8>}, {pipeline_mode = #tpu.pipeline_mode<synchronous>, transform_indices = @transform_1, window_bounds = array<i64: 1, 8>}, {pipeline_mode = #tpu.pipeline_mode<synchronous>, transform_indices = @transform_2, window_bounds = array<i64: 1, 8>}, {pipeline_mode = #tpu.pipeline_mode<synchronous>, transform_indices = @transform_3, window_bounds = array<i64: 72, 8>}, {transform_indices = @transform_4, window_bounds = array<i64: 1, 64, 8>}, {transform_indices = @transform_5, window_bounds = array<i64: 1, 2, 8>}]} {
    %c0 = arith.constant 0 : index
    %c0_0 = arith.constant 0 : index
    %c0_1 = arith.constant 0 : index
    %c0_2 = arith.constant 0 : index
    %0 = vector.load %arg1[%c0, %c0_0, %c0_1, %c0_2] : memref<1x16x16x8xf32, #tpu.memory_space<vmem>>, vector<1x16x16x8xf32>
    %1 = vector.shape_cast %0 : vector<1x16x16x8xf32> to vector<16x16x8xf32>
    %c0_3 = arith.constant 0 : index
    %c0_4 = arith.constant 0 : index
    %2 = vector.load %arg2[%c0_3, %c0_4] : memref<1x8xf32, #tpu.memory_space<vmem>>, vector<1x8xf32>
    %3 = vector.shape_cast %2 : vector<1x8xf32> to vector<1x1x8xf32>
    %4 = vector.broadcast %3 : vector<1x1x8xf32> to vector<16x16x8xf32>
    %5 = arith.mulf %1, %4 : vector<16x16x8xf32>
    %c0_5 = arith.constant 0 : index
    %c0_6 = arith.constant 0 : index
    %6 = vector.load %arg3[%c0_5, %c0_6] : memref<1x8xf32, #tpu.memory_space<vmem>>, vector<1x8xf32>
    %7 = vector.shape_cast %6 : vector<1x8xf32> to vector<1x1x8xf32>
    %8 = vector.broadcast %7 : vector<1x1x8xf32> to vector<16x16x8xf32>
    %9 = arith.addf %5, %8 : vector<16x16x8xf32>
    %cst = arith.constant 0.000000e+00 : f32
    %10 = vector.broadcast %cst : f32 to vector<16x16x8xf32>
    %11 = arith.maximumf %9, %10 : vector<16x16x8xf32>
    %cst_7 = arith.constant 0.000000e+00 : f32
    %12 = vector.broadcast %cst_7 : f32 to vector<1x16x8xf32>
    %13 = tpu.concatenate %12, %11 in 0 : vector<1x16x8xf32>, vector<16x16x8xf32> -> vector<17x16x8xf32>
    %cst_8 = arith.constant 0.000000e+00 : f32
    %14 = vector.broadcast %cst_8 : f32 to vector<17x1x8xf32>
    %15 = tpu.concatenate %14, %13 in 1 : vector<17x1x8xf32>, vector<17x16x8xf32> -> vector<17x17x8xf32>
    %16 = vector.extract_strided_slice %15 {offsets = [0, 0, 0], sizes = [8, 8, 8], strides = [1, 1, 1]} : vector<17x17x8xf32> to vector<8x8x8xf32>
    %17 = vector.shape_cast %16 : vector<8x8x8xf32> to vector<64x8xf32>
    %18 = vector.extract_strided_slice %15 {offsets = [0, 9, 0], sizes = [8, 8, 8], strides = [1, 1, 1]} : vector<17x17x8xf32> to vector<8x8x8xf32>
    %19 = vector.shape_cast %18 : vector<8x8x8xf32> to vector<64x8xf32>
    %20 = vector.extract_strided_slice %15 {offsets = [0, 1, 0], sizes = [8, 8, 8], strides = [1, 1, 1]} : vector<17x17x8xf32> to vector<8x8x8xf32>
    %21 = vector.shape_cast %20 : vector<8x8x8xf32> to vector<64x8xf32>
    %22 = vector.extract_strided_slice %15 {offsets = [9, 0, 0], sizes = [8, 8, 8], strides = [1, 1, 1]} : vector<17x17x8xf32> to vector<8x8x8xf32>
    %23 = vector.shape_cast %22 : vector<8x8x8xf32> to vector<64x8xf32>
    %24 = vector.extract_strided_slice %15 {offsets = [9, 9, 0], sizes = [8, 8, 8], strides = [1, 1, 1]} : vector<17x17x8xf32> to vector<8x8x8xf32>
    %25 = vector.shape_cast %24 : vector<8x8x8xf32> to vector<64x8xf32>
    %26 = vector.extract_strided_slice %15 {offsets = [9, 1, 0], sizes = [8, 8, 8], strides = [1, 1, 1]} : vector<17x17x8xf32> to vector<8x8x8xf32>
    %27 = vector.shape_cast %26 : vector<8x8x8xf32> to vector<64x8xf32>
    %28 = vector.extract_strided_slice %15 {offsets = [1, 0, 0], sizes = [8, 8, 8], strides = [1, 1, 1]} : vector<17x17x8xf32> to vector<8x8x8xf32>
    %29 = vector.shape_cast %28 : vector<8x8x8xf32> to vector<64x8xf32>
    %30 = vector.extract_strided_slice %15 {offsets = [1, 9, 0], sizes = [8, 8, 8], strides = [1, 1, 1]} : vector<17x17x8xf32> to vector<8x8x8xf32>
    %31 = vector.shape_cast %30 : vector<8x8x8xf32> to vector<64x8xf32>
    %32 = vector.extract_strided_slice %15 {offsets = [1, 1, 0], sizes = [8, 8, 8], strides = [1, 1, 1]} : vector<17x17x8xf32> to vector<8x8x8xf32>
    %33 = vector.shape_cast %32 : vector<8x8x8xf32> to vector<64x8xf32>
    %34 = tpu.concatenate %17, %19, %21, %23, %25, %27, %29, %31, %33 in 1 : vector<64x8xf32>, vector<64x8xf32>, vector<64x8xf32>, vector<64x8xf32>, vector<64x8xf32>, vector<64x8xf32>, vector<64x8xf32>, vector<64x8xf32>, vector<64x8xf32> -> vector<64x72xf32>
    %c0_9 = arith.constant 0 : index
    %c0_10 = arith.constant 0 : index
    %35 = vector.load %arg4[%c0_9, %c0_10] : memref<72x8xf32, #tpu.memory_space<vmem>>, vector<72x8xf32>
    %cst_11 = arith.constant dense<0.000000e+00> : vector<64x8xf32>
    %36 = tpu.matmul %34, %35, %cst_11 {dimension_numbers = #tpu.dot_dimension_numbers<[1], [0], [0], [1], [0, 0, 1, 1], [], []>} : vector<64x72xf32>, vector<72x8xf32>, vector<64x8xf32> -> vector<64x8xf32>
    %cst_12 = arith.constant dense<0.000000e+00> : vector<8xf32>
    %37 = vector.multi_reduction <add>, %36, %cst_12 [0] : vector<64x8xf32> to vector<8xf32>
    %38 = vector.shape_cast %37 : vector<8xf32> to vector<1x8xf32>
    %39 = arith.mulf %36, %36 : vector<64x8xf32>
    %cst_13 = arith.constant dense<0.000000e+00> : vector<8xf32>
    %40 = vector.multi_reduction <add>, %39, %cst_13 [0] : vector<64x8xf32> to vector<8xf32>
    %41 = vector.shape_cast %40 : vector<8xf32> to vector<1x8xf32>
    %42 = tpu.concatenate %38, %41 in 0 : vector<1x8xf32>, vector<1x8xf32> -> vector<2x8xf32>
    %c0_14 = arith.constant 0 : index
    %c0_15 = arith.constant 0 : index
    %c0_16 = arith.constant 0 : index
    %43 = vector.load %arg6[%c0_14, %c0_15, %c0_16] : memref<1x2x8xf32, #tpu.memory_space<vmem>>, vector<1x2x8xf32>
    %44 = vector.shape_cast %43 : vector<1x2x8xf32> to vector<2x8xf32>
    %45 = vector.shape_cast %42 : vector<2x8xf32> to vector<1x2x8xf32>
    tpu.vector_store %arg6[%c0_14, %c0_15, %c0_16], %45 {strides = array<i32>} : memref<1x2x8xf32, #tpu.memory_space<vmem>>, vector<1x2x8xf32>,
    %c0_17 = arith.constant 0 : index
    %c0_18 = arith.constant 0 : index
    %c0_19 = arith.constant 0 : index
    %46 = vector.load %arg5[%c0_17, %c0_18, %c0_19] : memref<1x64x8xf32, #tpu.memory_space<vmem>>, vector<1x64x8xf32>
    %47 = vector.shape_cast %46 : vector<1x64x8xf32> to vector<64x8xf32>
    %48 = vector.shape_cast %36 : vector<64x8xf32> to vector<1x64x8xf32>
    tpu.vector_store %arg5[%c0_17, %c0_18, %c0_19], %48 {strides = array<i32>} : memref<1x64x8xf32, #tpu.memory_space<vmem>>, vector<1x64x8xf32>,
    return
  }
  func.func @transform_0(%arg0: i32) -> (i32, i32, i32, i32) {
    %c0_i32 = arith.constant 0 : i32
    %c0_i32_0 = arith.constant 0 : i32
    %c0_i32_1 = arith.constant 0 : i32
    %c0_i32_2 = arith.constant 0 : i32
    return %arg0, %c0_i32, %c0_i32_0, %c0_i32_1 : i32, i32, i32, i32
  }
  func.func @transform_1(%arg0: i32) -> (i32, i32) {
    %c0_i32 = arith.constant 0 : i32
    %c0_i32_0 = arith.constant 0 : i32
    %c0_i32_1 = arith.constant 0 : i32
    return %c0_i32, %c0_i32_0 : i32, i32
  }
  func.func @transform_2(%arg0: i32) -> (i32, i32) {
    %c0_i32 = arith.constant 0 : i32
    %c0_i32_0 = arith.constant 0 : i32
    %c0_i32_1 = arith.constant 0 : i32
    return %c0_i32, %c0_i32_0 : i32, i32
  }
  func.func @transform_3(%arg0: i32) -> (i32, i32) {
    %c0_i32 = arith.constant 0 : i32
    %c0_i32_0 = arith.constant 0 : i32
    %c0_i32_1 = arith.constant 0 : i32
    return %c0_i32, %c0_i32_0 : i32, i32
  }
  func.func @transform_4(%arg0: i32) -> (i32, i32, i32) {
    %c0_i32 = arith.constant 0 : i32
    %c0_i32_0 = arith.constant 0 : i32
    %c0_i32_1 = arith.constant 0 : i32
    return %arg0, %c0_i32, %c0_i32_0 : i32, i32, i32
  }
  func.func @transform_5(%arg0: i32) -> (i32, i32, i32) {
    %c0_i32 = arith.constant 0 : i32
    %c0_i32_0 = arith.constant 0 : i32
    %c0_i32_1 = arith.constant 0 : i32
    return %arg0, %c0_i32, %c0_i32_0 : i32, i32, i32
  }
}

module attributes {stable_mosaic.version = 11 : i64} {
  func.func @bn2_relu_conv3_kernel(%arg0: i32, %arg1: memref<1x64x8xf32, #tpu.memory_space<vmem>>, %arg2: memref<1x8xf32, #tpu.memory_space<vmem>>, %arg3: memref<1x8xf32, #tpu.memory_space<vmem>>, %arg4: memref<8x8xf32, #tpu.memory_space<vmem>>, %arg5: memref<1x64x8xf32, #tpu.memory_space<vmem>>, %arg6: memref<1x2x8xf32, #tpu.memory_space<vmem>>) attributes {dimension_semantics = [#tpu.dimension_semantics<parallel>], iteration_bounds = array<i64: 2>, scalar_prefetch = 0 : i64, scratch_operands = 0 : i64, tpu.core_type = #tpu.core_type<tc>, window_params = [{transform_indices = @transform_0, window_bounds = array<i64: 1, 64, 8>}, {pipeline_mode = #tpu.pipeline_mode<synchronous>, transform_indices = @transform_1, window_bounds = array<i64: 1, 8>}, {pipeline_mode = #tpu.pipeline_mode<synchronous>, transform_indices = @transform_2, window_bounds = array<i64: 1, 8>}, {pipeline_mode = #tpu.pipeline_mode<synchronous>, transform_indices = @transform_3, window_bounds = array<i64: 8, 8>}, {transform_indices = @transform_4, window_bounds = array<i64: 1, 64, 8>}, {transform_indices = @transform_5, window_bounds = array<i64: 1, 2, 8>}]} {
    %c0 = arith.constant 0 : index
    %c0_0 = arith.constant 0 : index
    %c0_1 = arith.constant 0 : index
    %0 = vector.load %arg1[%c0, %c0_0, %c0_1] : memref<1x64x8xf32, #tpu.memory_space<vmem>>, vector<1x64x8xf32>
    %1 = vector.shape_cast %0 : vector<1x64x8xf32> to vector<64x8xf32>
    %c0_2 = arith.constant 0 : index
    %c0_3 = arith.constant 0 : index
    %2 = vector.load %arg2[%c0_2, %c0_3] : memref<1x8xf32, #tpu.memory_space<vmem>>, vector<1x8xf32>
    %3 = vector.broadcast %2 : vector<1x8xf32> to vector<64x8xf32>
    %4 = arith.mulf %1, %3 : vector<64x8xf32>
    %c0_4 = arith.constant 0 : index
    %c0_5 = arith.constant 0 : index
    %5 = vector.load %arg3[%c0_4, %c0_5] : memref<1x8xf32, #tpu.memory_space<vmem>>, vector<1x8xf32>
    %6 = vector.broadcast %5 : vector<1x8xf32> to vector<64x8xf32>
    %7 = arith.addf %4, %6 : vector<64x8xf32>
    %cst = arith.constant 0.000000e+00 : f32
    %8 = vector.broadcast %cst : f32 to vector<64x8xf32>
    %9 = arith.maximumf %7, %8 : vector<64x8xf32>
    %c0_6 = arith.constant 0 : index
    %c0_7 = arith.constant 0 : index
    %10 = vector.load %arg4[%c0_6, %c0_7] : memref<8x8xf32, #tpu.memory_space<vmem>>, vector<8x8xf32>
    %cst_8 = arith.constant dense<0.000000e+00> : vector<64x8xf32>
    %11 = tpu.matmul %9, %10, %cst_8 {dimension_numbers = #tpu.dot_dimension_numbers<[1], [0], [0], [1], [0, 0, 1, 1], [], []>} : vector<64x8xf32>, vector<8x8xf32>, vector<64x8xf32> -> vector<64x8xf32>
    %cst_9 = arith.constant dense<0.000000e+00> : vector<8xf32>
    %12 = vector.multi_reduction <add>, %11, %cst_9 [0] : vector<64x8xf32> to vector<8xf32>
    %13 = vector.shape_cast %12 : vector<8xf32> to vector<1x8xf32>
    %14 = arith.mulf %11, %11 : vector<64x8xf32>
    %cst_10 = arith.constant dense<0.000000e+00> : vector<8xf32>
    %15 = vector.multi_reduction <add>, %14, %cst_10 [0] : vector<64x8xf32> to vector<8xf32>
    %16 = vector.shape_cast %15 : vector<8xf32> to vector<1x8xf32>
    %17 = tpu.concatenate %13, %16 in 0 : vector<1x8xf32>, vector<1x8xf32> -> vector<2x8xf32>
    %c0_11 = arith.constant 0 : index
    %c0_12 = arith.constant 0 : index
    %c0_13 = arith.constant 0 : index
    %18 = vector.load %arg6[%c0_11, %c0_12, %c0_13] : memref<1x2x8xf32, #tpu.memory_space<vmem>>, vector<1x2x8xf32>
    %19 = vector.shape_cast %18 : vector<1x2x8xf32> to vector<2x8xf32>
    %20 = vector.shape_cast %17 : vector<2x8xf32> to vector<1x2x8xf32>
    tpu.vector_store %arg6[%c0_11, %c0_12, %c0_13], %20 {strides = array<i32>} : memref<1x2x8xf32, #tpu.memory_space<vmem>>, vector<1x2x8xf32>,
    %c0_14 = arith.constant 0 : index
    %c0_15 = arith.constant 0 : index
    %c0_16 = arith.constant 0 : index
    %21 = vector.load %arg5[%c0_14, %c0_15, %c0_16] : memref<1x64x8xf32, #tpu.memory_space<vmem>>, vector<1x64x8xf32>
    %22 = vector.shape_cast %21 : vector<1x64x8xf32> to vector<64x8xf32>
    %23 = vector.shape_cast %11 : vector<64x8xf32> to vector<1x64x8xf32>
    tpu.vector_store %arg5[%c0_14, %c0_15, %c0_16], %23 {strides = array<i32>} : memref<1x64x8xf32, #tpu.memory_space<vmem>>, vector<1x64x8xf32>,
    return
  }
  func.func @transform_0(%arg0: i32) -> (i32, i32, i32) {
    %c0_i32 = arith.constant 0 : i32
    %c0_i32_0 = arith.constant 0 : i32
    %c0_i32_1 = arith.constant 0 : i32
    return %arg0, %c0_i32, %c0_i32_0 : i32, i32, i32
  }
  func.func @transform_1(%arg0: i32) -> (i32, i32) {
    %c0_i32 = arith.constant 0 : i32
    %c0_i32_0 = arith.constant 0 : i32
    %c0_i32_1 = arith.constant 0 : i32
    return %c0_i32, %c0_i32_0 : i32, i32
  }
  func.func @transform_2(%arg0: i32) -> (i32, i32) {
    %c0_i32 = arith.constant 0 : i32
    %c0_i32_0 = arith.constant 0 : i32
    %c0_i32_1 = arith.constant 0 : i32
    return %c0_i32, %c0_i32_0 : i32, i32
  }
  func.func @transform_3(%arg0: i32) -> (i32, i32) {
    %c0_i32 = arith.constant 0 : i32
    %c0_i32_0 = arith.constant 0 : i32
    %c0_i32_1 = arith.constant 0 : i32
    return %c0_i32, %c0_i32_0 : i32, i32
  }
  func.func @transform_4(%arg0: i32) -> (i32, i32, i32) {
    %c0_i32 = arith.constant 0 : i32
    %c0_i32_0 = arith.constant 0 : i32
    %c0_i32_1 = arith.constant 0 : i32
    return %arg0, %c0_i32, %c0_i32_0 : i32, i32, i32
  }
  func.func @transform_5(%arg0: i32) -> (i32, i32, i32) {
    %c0_i32 = arith.constant 0 : i32
    %c0_i32_0 = arith.constant 0 : i32
    %c0_i32_1 = arith.constant 0 : i32
    return %arg0, %c0_i32, %c0_i32_0 : i32, i32, i32
  }
}

</mosaic_0001>

<bundles_post_ra>
// kernel: bottleneck_forward.6
= control target key start
LH: loop header
LB: loop body
LE: loop exit
PB: predicated region body
PF: predicated region fallthrough
CT: control target
= control target key end

     0   :  { %s564_s18 = smov 0   ;;  %s643_s0 = inlined_call_operand.vmem [shape: f32[2,64,8], index: 0, kind: input, shape index: {}]   ;;  %s644_s1 = inlined_call_operand.vmem [shape: f32[1,8], index: 1, kind: input, shape index: {}]   ;;  %s645_s2 = inlined_call_operand.vmem [shape: f32[1,8], index: 2, kind: input, shape index: {}]   ;;  %s646_s3 = inlined_call_operand.vmem [shape: f32[8,8], index: 3, kind: input, shape index: {}]   ;;  %s647_s4 = inlined_call_operand.vmem [shape: f32[2,64,8], index: 4, kind: output, shape index: {0}]   ;;  %s648_s5 = inlined_call_operand.vmem [shape: f32[2,2,8], index: 5, kind: output, shape index: {1}]  }
   0x1 LB: > { %s491_s19 = sadd.s32 4294967295, %s532_s18   ;;  %p495_p0 = scmp.ge.s32.totalorder %s532_s18, 1  ;;  %s532_s18 = sphi %s564_s18, %s16_s18  }
   0x2   : > { %p190_p1 = scmp.lt.s32.totalorder %s532_s18, 3 }
   0x4   : > { %p191_p2 = pnand %p495_p0, %p190_p1 }
   0x5   : > { %p222_p3 = scmp.lt.s32.totalorder (!%p191_p2), %s491_s19, 1 }
   0x6   : > { %194 = sbr.rel (%p191_p2) target bundleno = 186 (0xba), region = 36 }
   0xb   : > { %v276_v0 = vld [vmem:[%s646_s3] sm:$0xff]  ;;  %s650_s19 = smov (!%p222_p3, %s491_s19), 1  ;;  %vm277_vm0 = vcmask 64512   ;;  %vm393_vm1 = vcmask 1040384   ;;  %vm395_vm2 = vcmask 58368  }
   0xc   : > { %317 = vmatpush.msra.mxu0 %v276_v0  ;;  %514 = vmatpush.msra.mxu2 %v276_v0  ;;  %v524_v1 = vld [vmem:[%s644_s1] ss:$0 sm:$0xff]  ;;  %s511_s24 = sshll.u32 %s650_s19, 6  ;;  %s500_s8 = sshll.u32 %s650_s19, 1 }
   0xd   : > { %513 = vmatpush.msra.mxu1 %v276_v0  ;;  %515 = vmatpush.msra.mxu3 %v276_v0  ;;  %s226_s27 = scalar_lea.vmem %s643_s0, %s511_s24  ;;  %v525_v2 = vld [vmem:[%s645_s2] ss:$0 sm:$0xff]  ;;  %s602_s7 = scalar_lea.vmem %s647_s4, %s511_s24 }
   0xe   : > { %v236_v3 = vld [vmem:[%s226_s27] sm:$0xff]  ;;  %v238_v5 = vld [vmem:[%s226_s27 + $0x10] sm:$0xff]  ;;  %v237_v10 = vld [vmem:[%s226_s27 + $0x8] sm:$0xff]  ;;  %s235_s11 = scalar_lea.vmem %s648_s5, %s500_s8 }
   0xf   : > { %v240_v4 = vld [vmem:[%s226_s27 + $0x20] sm:$0xff]  ;;  %v248_v6 = vmul.f32 %v524_v1, %v236_v3  ;;  %v250_v8 = vmul.f32 %v524_v1, %v238_v5  ;;  %v242_v9 = vld [vmem:[%s226_s27 + $0x30] sm:$0xff]  ;;  %v241_v11 = vld [vmem:[%s226_s27 + $0x28] sm:$0xff]  ;;  %v249_v13 = vmul.f32 %v524_v1, %v237_v10 }
  0x10   : > { %v252_v7 = vmul.f32 %v524_v1, %v240_v4  ;;  %v254_v12 = vmul.f32 %v524_v1, %v242_v9  ;;  %v239_v14 = vld [vmem:[%s226_s27 + $0x18] sm:$0xff]  ;;  %v253_v19 = vmul.f32 %v524_v1, %v241_v11 }
  0x11   : > { %v243_v15 = vld [vmem:[%s226_s27 + $0x38] sm:$0xff]  ;;  %v260_v16 = vadd.f32 %v525_v2, %v248_v6  ;;  %v262_v18 = vadd.f32 %v525_v2, %v250_v8  ;;  %v251_v21 = vmul.f32 %v524_v1, %v239_v14  ;;  %v261_v27 = vadd.f32 %v525_v2, %v249_v13 }
  0x12   : > { %v264_v17 = vadd.f32 %v525_v2, %v252_v7  ;;  %v266_v20 = vadd.f32 %v525_v2, %v254_v12  ;;  %v255_v22 = vmul.f32 %v524_v1, %v243_v15  ;;  %v265_v28 = vadd.f32 %v525_v2, %v253_v19 }
  0x13   : > { %v268_v23 = vmax.f32 %v260_v16, 0.0  ;;  %v270_v25 = vmax.f32 %v262_v18, 0.0  ;;  %v263_v29 = vadd.f32 %v525_v2, %v251_v21  ;;  %v269_v31 = vmax.f32 %v261_v27, 0.0 }
  0x14   : > { %v272_v24 = vmax.f32 %v264_v17, 0.0  ;;  %v274_v26 = vmax.f32 %v266_v20, 0.0  ;;  %v267_v30 = vadd.f32 %v525_v2, %v255_v22  ;;  %v273_v32 = vmax.f32 %v265_v28, 0.0 }
  0x15   : > { %501 = vmatmul.msk.f32.vlgmr.msra.gmra.mxu0 %vm277_vm0, %v268_v23  ;;  %503 = vmatmul.msk.f32.vlgmr.msra.gmra.mxu1 %vm277_vm0, %v270_v25  ;;  %v271_v33 = vmax.f32 %v263_v29, 0.0 }
  0x16   : > { %505 = vmatmul.msk.f32.vlgmr.msra.gmra.mxu2 %vm277_vm0, %v272_v24  ;;  %507 = vmatmul.msk.f32.vlgmr.msra.gmra.mxu3 %vm277_vm0, %v274_v26  ;;  %v275_v34 = vmax.f32 %v267_v30, 0.0 }
  0x1d   : > { %502 = vmatmul.msk.f32.gmra.mxu0 %vm277_vm0, %v269_v31  ;;  %504 = vmatmul.msk.f32.gmra.mxu1 %vm277_vm0, %v271_v33 }
  0x1e   : > { %506 = vmatmul.msk.f32.gmra.mxu2 %vm277_vm0, %v273_v32  ;;  %508 = vmatmul.msk.f32.gmra.mxu3 %vm277_vm0, %v275_v34 }
  0x92   : > { %v319_v35 = vpop.f32.mrf.mxu0  ;;  %v325_v36 = vpop.f32.mrf.mxu1 }
  0x93   : > { %397 = vst.msk [vmem:[%s602_s7] sm:$0xff] %vm277_vm0, %v319_v35  ;;  %v364_v38 = vmul.f32 %v319_v35, %v319_v35  ;;  %v343_v41 = vsel %vm277_vm0, %v319_v35, 0.0  ;;  %v366_v42 = vmul.f32 %v325_v36, %v325_v36  ;;  %v346_v49 = vsel %vm277_vm0, %v325_v36, 0.0 }
  0x94   : > { %399 = vst.msk [vmem:[%s602_s7 + $0x10] sm:$0xff] %vm277_vm0, %v325_v36 }
  0x95   : > { %v372_v48 = vsel %vm277_vm0, %v364_v38, 0.0  ;;  %v375_v54 = vsel %vm277_vm0, %v366_v42, 0.0 }
  0x99   : > { %v331_v37 = vpop.f32.mrf.mxu2  ;;  %v337_v39 = vpop.f32.mrf.mxu3 }
  0x9a   : > { %401 = vst.msk [vmem:[%s602_s7 + $0x20] sm:$0xff] %vm277_vm0, %v331_v37  ;;  %v322_v40 = vpop.f32.mrf.mxu0  ;;  %v328_v45 = vpop.f32.mrf.mxu1  ;;  %v368_v55 = vmul.f32 %v331_v37, %v331_v37  ;;  %v350_v60 = vsel %vm277_vm0, %v331_v37, 0.0  ;;  %v370_v3 = vmul.f32 %v337_v39, %v337_v39  ;;  %v354_v8 = vsel %vm277_vm0, %v337_v39, 0.0 }
  0x9b   : > { %403 = vst.msk [vmem:[%s602_s7 + $0x30] sm:$0xff] %vm277_vm0, %v337_v39  ;;  %v344_v43 = vsel %vm277_vm0, %v322_v40, 0.0  ;;  %v365_v44 = vmul.f32 %v322_v40, %v322_v40  ;;  %v367_v47 = vmul.f32 %v328_v45, %v328_v45  ;;  %v348_v51 = vsel %vm277_vm0, %v328_v45, 0.0 }
  0x9c   : > { %398 = vst.msk [vmem:[%s602_s7 + $0x8] sm:$0xff] %vm277_vm0, %v322_v40  ;;  %v345_v46 = vadd.f32 %v344_v43, %v343_v41  ;;  %v379_v2 = vsel %vm277_vm0, %v368_v55, 0.0  ;;  %v383_v12 = vsel %vm277_vm0, %v370_v3, 0.0 }
  0x9d   : > { %400 = vst.msk [vmem:[%s602_s7 + $0x18] sm:$0xff] %vm277_vm0, %v328_v45  ;;  %v373_v50 = vsel %vm277_vm0, %v365_v44, 0.0  ;;  %v377_v56 = vsel %vm277_vm0, %v367_v47, 0.0 }
  0x9e   : > { %v374_v52 = vadd.f32 %v373_v50, %v372_v48  ;;  %v347_v53 = vadd.f32 %v346_v49, %v345_v46 }
  0xa0   : > { %v349_v57 = vadd.f32 %v348_v51, %v347_v53  ;;  %v376_v58 = vadd.f32 %v375_v54, %v374_v52 }
  0xa1   : > { %v334_v59 = vpop.f32.mrf.mxu2  ;;  %v340_v63 = vpop.f32.mrf.mxu3 }
  0xa2   : > { %v352_v61 = vsel %vm277_vm0, %v334_v59, 0.0  ;;  %v369_v62 = vmul.f32 %v334_v59, %v334_v59  ;;  %402 = vst.msk [vmem:[%s602_s7 + $0x28] sm:$0xff] %vm277_vm0, %v334_v59  ;;  %v378_v0 = vadd.f32 %v377_v56, %v376_v58  ;;  %v351_v1 = vadd.f32 %v350_v60, %v349_v57 }
  0xa3   : > { %404 = vst.msk [vmem:[%s602_s7 + $0x38] sm:$0xff] %vm277_vm0, %v340_v63  ;;  %v371_v5 = vmul.f32 %v340_v63, %v340_v63  ;;  %v356_v9 = vsel %vm277_vm0, %v340_v63, 0.0 }
  0xa4   : > { %v381_v4 = vsel %vm277_vm0, %v369_v62, 0.0  ;;  %v353_v6 = vadd.f32 %v352_v61, %v351_v1  ;;  %v380_v7 = vadd.f32 %v379_v2, %v378_v0 }
  0xa5   : > { %v385_v13 = vsel %vm277_vm0, %v371_v5, 0.0 }
  0xa6   : > { %v382_v10 = vadd.f32 %v381_v4, %v380_v7  ;;  %v355_v11 = vadd.f32 %v354_v8, %v353_v6 }
  0xa8   : > { %v357_v14 = vadd.f32 %v356_v9, %v355_v11  ;;  %v384_v15 = vadd.f32 %v383_v12, %v382_v10 }
  0xaa   : > { %v358_v16 = vrot.slane %v357_v14, 4  ;;  %v386_v17 = vadd.f32 %v385_v13, %v384_v15 }
  0xac   : > { %v359_v18 = vadd.f32 %v358_v16, %v357_v14  ;;  %v387_v19 = vrot.slane %v386_v17, 4 }
  0xae   : > { %v360_v20 = vrot.slane %v359_v18, 2  ;;  %v388_v21 = vadd.f32 %v387_v19, %v386_v17 }
  0xb0   : > { %v361_v22 = vadd.f32 %v360_v20, %v359_v18  ;;  %v389_v23 = vrot.slane %v388_v21, 2 }
  0xb2   : > { %v362_v24 = vrot.slane %v361_v22, 1  ;;  %v390_v25 = vadd.f32 %v389_v23, %v388_v21 }
  0xb4   : > { %v391_v26 = vrot.slane %v390_v25, 1  ;;  %v363_v27 = vadd.f32 %v362_v24, %v361_v22 }
  0xb6   : > { %v392_v28 = vadd.f32 %v391_v26, %v390_v25 }
  0xb8   : > { %v394_v29 = vsel %vm393_vm1, %v363_v27, %v392_v28 }
  0xb9   : > { %396 = vst.msk [vmem:[%s235_s11] sm:$0x3] %vm395_vm2, %v394_v29 }
  0xba PF: > { %s16_s18 = sadd.s32 1, %s532_s18  }
  0xbb   : > { %p13_p4 = scmp.ge.s32.totalorder %s16_s18, 4  }
  0xbd   :  { %15 = sbr.rel (!%p13_p4) target bundleno = 1 (0x1), region = 78 }

// kernel: bottleneck_forward.7
= control target key start
LH: loop header
LB: loop body
LE: loop exit
PB: predicated region body
PF: predicated region fallthrough
CT: control target
= control target key end

     0   :  { %s499_s21 = smov 0   ;;  %s594_s0 = inlined_call_operand.vmem [shape: f32[2,64,8], index: 0, kind: input, shape index: {}]   ;;  %s595_s1 = inlined_call_operand.vmem [shape: f32[2,64,8], index: 1, kind: input, shape index: {}]   ;;  %s596_s2 = inlined_call_operand.vmem [shape: f32[1,8], index: 2, kind: input, shape index: {}]   ;;  %s597_s3 = inlined_call_operand.vmem [shape: f32[1,8], index: 3, kind: input, shape index: {}]   ;;  %s598_s4 = inlined_call_operand.vmem [shape: f32[1,8], index: 4, kind: input, shape index: {}]   ;;  %s599_s5 = inlined_call_operand.vmem [shape: f32[1,8], index: 5, kind: input, shape index: {}]   ;;  %s600_s6 = inlined_call_operand.vmem [shape: f32[2,64,8], index: 6, kind: output, shape index: {}]  }
   0x1 LB: > { %s428_s22 = sadd.s32 4294967295, %s462_s21   ;;  %p432_p0 = scmp.ge.s32.totalorder %s462_s21, 1  ;;  %s462_s21 = sphi %s499_s21, %s16_s21  }
   0x2   : > { %p222_p1 = scmp.lt.s32.totalorder %s462_s21, 3 }
   0x4   : > { %p223_p2 = pnand %p432_p0, %p222_p1 }
   0x5   : > { %p257_p3 = scmp.lt.s32.totalorder (!%p223_p2), %s428_s22, 1 }
   0x6   : > { %226 = sbr.rel (%p223_p2) target bundleno = 34 (0x22), region = 44 }
   0xb   : > { %s602_s22 = smov (!%p257_p3, %s428_s22), 1  ;;  %v452_v0 = vld [vmem:[%s596_s2] ss:$0 sm:$0xff]  ;;  %vm352_vm0 = vcmask 64512  }
   0xc   : > { %v513_v1 = vld [vmem:[%s598_s4] ss:$0 sm:$0xff]  ;;  %s515_s27 = sshll.u32 %s602_s22, 6 }
   0xd   : > { %s521_s30 = scalar_lea.vmem %s594_s0, %s515_s27  ;;  %s527_s9 = scalar_lea.vmem %s595_s1, %s515_s27  ;;  %v453_v2 = vld [vmem:[%s597_s3] ss:$0 sm:$0xff] }
   0xe   : > { %v272_v3 = vld [vmem:[%s521_s30] sm:$0xff]  ;;  %v273_v5 = vld [vmem:[%s521_s30 + $0x8] sm:$0xff]  ;;  %v274_v11 = vld [vmem:[%s521_s30 + $0x10] sm:$0xff]  ;;  %s565_s16 = scalar_lea.vmem %s600_s6, %s515_s27 }
   0xf   : > { %v304_v4 = vld [vmem:[%s527_s9] sm:$0xff]  ;;  %v284_v6 = vmul.f32 %v452_v0, %v272_v3  ;;  %v285_v9 = vmul.f32 %v452_v0, %v273_v5  ;;  %v305_v10 = vld [vmem:[%s527_s9 + $0x8] sm:$0xff]  ;;  %v306_v12 = vld [vmem:[%s527_s9 + $0x10] sm:$0xff]  ;;  %v286_v14 = vmul.f32 %v452_v0, %v274_v11 }
  0x10   : > { %v316_v7 = vmul.f32 %v513_v1, %v304_v4  ;;  %v539_v8 = vld [vmem:[%s599_s5] ss:$0 sm:$0xff]  ;;  %v317_v13 = vmul.f32 %v513_v1, %v305_v10  ;;  %v318_v15 = vmul.f32 %v513_v1, %v306_v12  ;;  %v275_v16 = vld [vmem:[%s521_s30 + $0x18] sm:$0xff]  ;;  %v277_v24 = vld [vmem:[%s521_s30 + $0x28] sm:$0xff] }
  0x11   : > { %v307_v17 = vld [vmem:[%s527_s9 + $0x18] sm:$0xff]  ;;  %v276_v18 = vld [vmem:[%s521_s30 + $0x20] sm:$0xff]  ;;  %v296_v19 = vadd.f32 %v453_v2, %v284_v6  ;;  %v297_v20 = vadd.f32 %v453_v2, %v285_v9  ;;  %v287_v21 = vmul.f32 %v452_v0, %v275_v16  ;;  %v309_v25 = vld [vmem:[%s527_s9 + $0x28] sm:$0xff]  ;;  %v298_v26 = vadd.f32 %v453_v2, %v286_v14 }
  0x12   : > { %v319_v22 = vmul.f32 %v513_v1, %v307_v17  ;;  %v308_v23 = vld [vmem:[%s527_s9 + $0x20] sm:$0xff]  ;;  %v288_v27 = vmul.f32 %v452_v0, %v276_v18  ;;  %v289_v29 = vmul.f32 %v452_v0, %v277_v24  ;;  %v278_v30 = vld [vmem:[%s521_s30 + $0x30] sm:$0xff]  ;;  %v321_v35 = vmul.f32 %v513_v1, %v309_v25  ;;  %v279_v40 = vld [vmem:[%s521_s30 + $0x38] sm:$0xff] }
  0x13   : > { %v320_v28 = vmul.f32 %v513_v1, %v308_v23  ;;  %v310_v31 = vld [vmem:[%s527_s9 + $0x30] sm:$0xff]  ;;  %v324_v32 = vadd.f32 %v316_v7, %v296_v19  ;;  %v325_v33 = vadd.f32 %v317_v13, %v297_v20  ;;  %v299_v34 = vadd.f32 %v453_v2, %v287_v21  ;;  %v311_v49 = vld [vmem:[%s527_s9 + $0x38] sm:$0xff] }
  0x14   : > { %v326_v36 = vadd.f32 %v318_v15, %v298_v26  ;;  %v300_v37 = vadd.f32 %v453_v2, %v288_v27  ;;  %v301_v38 = vadd.f32 %v453_v2, %v289_v29  ;;  %v290_v39 = vmul.f32 %v452_v0, %v278_v30 }
  0x15   : > { %v336_v41 = vadd.f32 %v539_v8, %v324_v32  ;;  %v337_v42 = vadd.f32 %v539_v8, %v325_v33  ;;  %v327_v43 = vadd.f32 %v319_v22, %v299_v34  ;;  %v322_v44 = vmul.f32 %v513_v1, %v310_v31 }
  0x16   : > { %v338_v45 = vadd.f32 %v539_v8, %v326_v36  ;;  %v328_v46 = vadd.f32 %v320_v28, %v300_v37  ;;  %v329_v47 = vadd.f32 %v321_v35, %v301_v38  ;;  %v302_v48 = vadd.f32 %v453_v2, %v290_v39 }
  0x17   : > { %v344_v50 = vmax.f32 %v336_v41, 0.0  ;;  %v345_v51 = vmax.f32 %v337_v42, 0.0  ;;  %v339_v52 = vadd.f32 %v539_v8, %v327_v43  ;;  %v291_v53 = vmul.f32 %v452_v0, %v279_v40 }
  0x18   : > { %v346_v54 = vmax.f32 %v338_v45, 0.0  ;;  %v340_v55 = vadd.f32 %v539_v8, %v328_v46  ;;  %v341_v56 = vadd.f32 %v539_v8, %v329_v47  ;;  %v330_v57 = vadd.f32 %v322_v44, %v302_v48 }
  0x19   : > { %353 = vst.msk [vmem:[%s565_s16] sm:$0xff] %vm352_vm0, %v344_v50  ;;  %v347_v58 = vmax.f32 %v339_v52, 0.0  ;;  %v303_v59 = vadd.f32 %v453_v2, %v291_v53  ;;  %v323_v60 = vmul.f32 %v513_v1, %v311_v49 }
  0x1a   : > { %354 = vst.msk [vmem:[%s565_s16 + $0x8] sm:$0xff] %vm352_vm0, %v345_v51  ;;  %v348_v61 = vmax.f32 %v340_v55, 0.0  ;;  %v349_v62 = vmax.f32 %v341_v56, 0.0  ;;  %v342_v63 = vadd.f32 %v539_v8, %v330_v57 }
  0x1b   : > { %355 = vst.msk [vmem:[%s565_s16 + $0x10] sm:$0xff] %vm352_vm0, %v346_v54  ;;  %v331_v0 = vadd.f32 %v323_v60, %v303_v59 }
  0x1c   : > { %356 = vst.msk [vmem:[%s565_s16 + $0x18] sm:$0xff] %vm352_vm0, %v347_v58  ;;  %v350_v3 = vmax.f32 %v342_v63, 0.0 }
  0x1d   : > { %357 = vst.msk [vmem:[%s565_s16 + $0x20] sm:$0xff] %vm352_vm0, %v348_v61  ;;  %v343_v4 = vadd.f32 %v539_v8, %v331_v0 }
  0x1e   : > { %358 = vst.msk [vmem:[%s565_s16 + $0x28] sm:$0xff] %vm352_vm0, %v349_v62 }
  0x1f   : > { %359 = vst.msk [vmem:[%s565_s16 + $0x30] sm:$0xff] %vm352_vm0, %v350_v3  ;;  %v351_v1 = vmax.f32 %v343_v4, 0.0 }
  0x21   : > { %360 = vst.msk [vmem:[%s565_s16 + $0x38] sm:$0xff] %vm352_vm0, %v351_v1 }
  0x22 PF: > { %s16_s21 = sadd.s32 1, %s462_s21  }
  0x23   : > { %p13_p4 = scmp.ge.s32.totalorder %s16_s21, 4  }
  0x25   :  { %15 = sbr.rel (!%p13_p4) target bundleno = 1 (0x1), region = 77 }

// kernel: bottleneck_forward.4
= control target key start
LH: loop header
LB: loop body
LE: loop exit
PB: predicated region body
PF: predicated region fallthrough
CT: control target
= control target key end

     0   :  { %s1207_s24 = smov 0   ;;  %s1679_s0 = inlined_call_operand.vmem [shape: f32[2,256,4], index: 0, kind: input, shape index: {}]   ;;  %s1680_s1 = inlined_call_operand.vmem [shape: f32[2,64,4], index: 1, kind: input, shape index: {}]   ;;  %s1681_s2 = inlined_call_operand.vmem [shape: f32[4,8], index: 2, kind: input, shape index: {}]   ;;  %s1682_s3 = inlined_call_operand.vmem [shape: f32[4,8], index: 3, kind: input, shape index: {}]   ;;  %s1683_s4 = inlined_call_operand.vmem [shape: f32[2,256,8], index: 4, kind: output, shape index: {0}]   ;;  %s1684_s5 = inlined_call_operand.vmem [shape: f32[2,2,8], index: 5, kind: output, shape index: {1}]   ;;  %s1685_s6 = inlined_call_operand.vmem [shape: f32[2,64,8], index: 6, kind: output, shape index: {2}]   ;;  %s1686_s7 = inlined_call_operand.vmem [shape: f32[2,2,8], index: 7, kind: output, shape index: {3}]  }
   0x1 LB: > { %s1085_s25 = sadd.s32 4294967295, %s1165_s24   ;;  %p1089_p0 = scmp.ge.s32.totalorder %s1165_s24, 1  ;;  %s1165_s24 = sphi %s1207_s24, %s18_s24  }
   0x2   : > { %p254_p1 = scmp.lt.s32.totalorder %s1165_s24, 3 }
   0x4   : > { %p255_p2 = pnand %p1089_p0, %p254_p1 }
   0x5   : > { %p304_p3 = scmp.lt.s32.totalorder (!%p255_p2), %s1085_s25, 1 }
   0x6   : > { %258 = sbr.rel (%p255_p2) target bundleno = 276 (0x114), region = 36 }
   0xb   : > { %v364_v0 = vld [vmem:[%s1681_s2] sm:$0xf]  ;;  %vm462_vm0 = vcmask 1043456   ;;  %s1688_s25 = smov (!%p304_p3, %s1085_s25), 1  ;;  %vm365_vm1 = vcmask 31744   ;;  %vm579_vm2 = vcmask 64512  }
   0xc   : > { %1100 = vmatpush.msk.msra.mxu0 %vm462_vm0, %v364_v0  ;;  %1148 = vmatpush.msk.msra.mxu1 %vm462_vm0, %v364_v0  ;;  %v794_v1 = vld [vmem:[%s1682_s3] sm:$0xf]  ;;  %s1144_s30 = sshll.u32 %s1688_s25, 8  ;;  %s1145_s11 = sshll.u32 %s1688_s25, 6  ;;  %vm750_vm3 = vcmask 1040384   ;;  %vm752_vm4 = vcmask 58368  }
   0xd   : > { %1149 = vmatpush.msk.msra.mxu2 %vm462_vm0, %v364_v0  ;;  %1150 = vmatpush.msk.msra.mxu3 %vm462_vm0, %v364_v0  ;;  %s1229_s10 = scalar_lea.vmem %s1679_s0, %s1144_s30  ;;  %s1251_s14 = scalar_lea.vmem %s1680_s1, %s1145_s11 }
   0xe   : > { %1133 = vmatpush.msk.msrb.mxu1 %vm462_vm0, %v794_v1  ;;  %v332_v2 = vld [vmem:[%s1229_s10] sm:$0xff]  ;;  %v342_v3 = vld [vmem:[%s1229_s10 + $0x50] sm:$0xff]  ;;  %v333_v6 = vld [vmem:[%s1229_s10 + $0x8] sm:$0xff]  ;;  %s1324_s17 = scalar_lea.vmem %s1683_s4, %s1144_s30  ;;  %s1361_s20 = scalar_lea.vmem %s1685_s6, %s1145_s11 }
   0xf   : > { %1101 = vmatmul.msk.f32.vlgmr.msra.gmra.mxu0 %vm365_vm1, %v332_v2  ;;  %1111 = vmatmul.msk.f32.vlgmr.msra.gmra.mxu1 %vm365_vm1, %v342_v3  ;;  %v344_v4 = vld [vmem:[%s1229_s10 + $0x60] sm:$0xff]  ;;  %v354_v5 = vld [vmem:[%s1229_s10 + $0xb0] sm:$0xff]  ;;  %v343_v7 = vld [vmem:[%s1229_s10 + $0x58] sm:$0xff]  ;;  %s1096_s21 = sshll.u32 %s1688_s25, 1 }
  0x10   : > { %1113 = vmatmul.msk.f32.vlgmr.msra.gmra.mxu2 %vm365_vm1, %v344_v4  ;;  %1123 = vmatmul.msk.f32.vlgmr.msra.gmra.mxu3 %vm365_vm1, %v354_v5  ;;  %v345_v8 = vld [vmem:[%s1229_s10 + $0x68] sm:$0xff]  ;;  %v355_v9 = vld [vmem:[%s1229_s10 + $0xb8] sm:$0xff]  ;;  %v334_v10 = vld [vmem:[%s1229_s10 + $0x10] sm:$0xff]  ;;  %s331_s26 = scalar_lea.vmem %s1686_s7, %s1096_s21  ;;  %s322_s29 = scalar_lea.vmem %s1684_s5, %s1096_s21 }
  0x11   : > { %v786_v11 = vld [vmem:[%s1251_s14] sm:$0xff]  ;;  %v346_v12 = vld [vmem:[%s1229_s10 + $0x70] sm:$0xff]  ;;  %v335_v14 = vld [vmem:[%s1229_s10 + $0x18] sm:$0xff] }
  0x12   : > { %v356_v13 = vld [vmem:[%s1229_s10 + $0xc0] sm:$0xff]  ;;  %v787_v15 = vld [vmem:[%s1251_s14 + $0x8] sm:$0xff]  ;;  %v347_v16 = vld [vmem:[%s1229_s10 + $0x78] sm:$0xff] }
  0x13   : > { %v357_v17 = vld [vmem:[%s1229_s10 + $0xc8] sm:$0xff]  ;;  %v336_v18 = vld [vmem:[%s1229_s10 + $0x20] sm:$0xff]  ;;  %v788_v19 = vld [vmem:[%s1251_s14 + $0x10] sm:$0xff] }
  0x14   : > { %v348_v20 = vld [vmem:[%s1229_s10 + $0x80] sm:$0xff]  ;;  %v358_v21 = vld [vmem:[%s1229_s10 + $0xd0] sm:$0xff]  ;;  %v337_v22 = vld [vmem:[%s1229_s10 + $0x28] sm:$0xff] }
  0x15   : > { %v789_v23 = vld [vmem:[%s1251_s14 + $0x18] sm:$0xff]  ;;  %v349_v24 = vld [vmem:[%s1229_s10 + $0x88] sm:$0xff]  ;;  %v338_v26 = vld [vmem:[%s1229_s10 + $0x30] sm:$0xff] }
  0x16   : > { %v359_v25 = vld [vmem:[%s1229_s10 + $0xd8] sm:$0xff]  ;;  %v790_v27 = vld [vmem:[%s1251_s14 + $0x20] sm:$0xff]  ;;  %v350_v28 = vld [vmem:[%s1229_s10 + $0x90] sm:$0xff] }
  0x17   : > { %1102 = vmatmul.msk.f32.gmra.mxu0 %vm365_vm1, %v333_v6  ;;  %1112 = vmatmul.msk.f32.gmra.mxu1 %vm365_vm1, %v343_v7  ;;  %v360_v29 = vld [vmem:[%s1229_s10 + $0xe0] sm:$0xff]  ;;  %v339_v30 = vld [vmem:[%s1229_s10 + $0x38] sm:$0xff]  ;;  %v791_v31 = vld [vmem:[%s1251_s14 + $0x28] sm:$0xff] }
  0x18   : > { %1114 = vmatmul.msk.f32.gmra.mxu2 %vm365_vm1, %v345_v8  ;;  %1124 = vmatmul.msk.f32.gmra.mxu3 %vm365_vm1, %v355_v9  ;;  %v351_v32 = vld [vmem:[%s1229_s10 + $0x98] sm:$0xff]  ;;  %v361_v33 = vld [vmem:[%s1229_s10 + $0xe8] sm:$0xff]  ;;  %v340_v34 = vld [vmem:[%s1229_s10 + $0x40] sm:$0xff] }
  0x19   : > { %v792_v35 = vld [vmem:[%s1251_s14 + $0x30] sm:$0xff]  ;;  %v352_v36 = vld [vmem:[%s1229_s10 + $0xa0] sm:$0xff]  ;;  %v341_v38 = vld [vmem:[%s1229_s10 + $0x48] sm:$0xff] }
  0x1a   : > { %v362_v37 = vld [vmem:[%s1229_s10 + $0xf0] sm:$0xff]  ;;  %v793_v39 = vld [vmem:[%s1251_s14 + $0x38] sm:$0xff]  ;;  %v353_v40 = vld [vmem:[%s1229_s10 + $0xa8] sm:$0xff] }
  0x1b   : > { %v363_v41 = vld [vmem:[%s1229_s10 + $0xf8] sm:$0xff] }
  0x1f   : > { %1103 = vmatmul.msk.f32.gmra.mxu0 %vm365_vm1, %v334_v10  ;;  %1134 = vmatmul.msk.f32.vlgmr.msrb.gmra.mxu1 %vm365_vm1, %v786_v11 }
  0x20   : > { %1115 = vmatmul.msk.f32.gmra.mxu2 %vm365_vm1, %v346_v12  ;;  %1125 = vmatmul.msk.f32.gmra.mxu3 %vm365_vm1, %v356_v13 }
  0x27   : > { %1104 = vmatmul.msk.f32.gmra.mxu0 %vm365_vm1, %v335_v14  ;;  %1135 = vmatmul.msk.f32.gmra.mxu1 %vm365_vm1, %v787_v15 }
  0x28   : > { %1116 = vmatmul.msk.f32.gmra.mxu2 %vm365_vm1, %v347_v16  ;;  %1126 = vmatmul.msk.f32.gmra.mxu3 %vm365_vm1, %v357_v17 }
  0x2f   : > { %1105 = vmatmul.msk.f32.gmra.mxu0 %vm365_vm1, %v336_v18  ;;  %1136 = vmatmul.msk.f32.gmra.mxu1 %vm365_vm1, %v788_v19 }
  0x30   : > { %1117 = vmatmul.msk.f32.gmra.mxu2 %vm365_vm1, %v348_v20  ;;  %1127 = vmatmul.msk.f32.gmra.mxu3 %vm365_vm1, %v358_v21 }
  0x37   : > { %1106 = vmatmul.msk.f32.gmra.mxu0 %vm365_vm1, %v337_v22  ;;  %1137 = vmatmul.msk.f32.gmra.mxu1 %vm365_vm1, %v789_v23 }
  0x38   : > { %1118 = vmatmul.msk.f32.gmra.mxu2 %vm365_vm1, %v349_v24  ;;  %1128 = vmatmul.msk.f32.gmra.mxu3 %vm365_vm1, %v359_v25 }
  0x3f   : > { %1107 = vmatmul.msk.f32.gmra.mxu0 %vm365_vm1, %v338_v26  ;;  %1138 = vmatmul.msk.f32.gmra.mxu1 %vm365_vm1, %v790_v27 }
  0x40   : > { %1119 = vmatmul.msk.f32.gmra.mxu2 %vm365_vm1, %v350_v28  ;;  %1129 = vmatmul.msk.f32.gmra.mxu3 %vm365_vm1, %v360_v29 }
  0x47   : > { %1108 = vmatmul.msk.f32.gmra.mxu0 %vm365_vm1, %v339_v30  ;;  %1139 = vmatmul.msk.f32.gmra.mxu1 %vm365_vm1, %v791_v31 }
  0x48   : > { %1120 = vmatmul.msk.f32.gmra.mxu2 %vm365_vm1, %v351_v32  ;;  %1130 = vmatmul.msk.f32.gmra.mxu3 %vm365_vm1, %v361_v33 }
  0x4f   : > { %1109 = vmatmul.msk.f32.gmra.mxu0 %vm365_vm1, %v340_v34  ;;  %1140 = vmatmul.msk.f32.gmra.mxu1 %vm365_vm1, %v792_v35 }
  0x50   : > { %1121 = vmatmul.msk.f32.gmra.mxu2 %vm365_vm1, %v352_v36  ;;  %1131 = vmatmul.msk.f32.gmra.mxu3 %vm365_vm1, %v362_v37 }
  0x57   : > { %1110 = vmatmul.msk.f32.gmra.mxu0 %vm365_vm1, %v341_v38  ;;  %1141 = vmatmul.msk.f32.gmra.mxu1 %vm365_vm1, %v793_v39 }
  0x58   : > { %1122 = vmatmul.msk.f32.gmra.mxu2 %vm365_vm1, %v353_v40  ;;  %1132 = vmatmul.msk.f32.gmra.mxu3 %vm365_vm1, %v363_v41 }
  0x8c   : > { %v1326_v42 = vpop.f32.mrf.mxu0  ;;  %v1328_v43 = vpop.f32.mrf.mxu1 }
  0x8d   : > { %754 = vst.msk [vmem:[%s1324_s17] sm:$0xff] %vm579_vm2, %v1326_v42  ;;  %v649_v17 = vmul.f32 %v1326_v42, %v1326_v42  ;;  %v580_v22 = vsel %vm579_vm2, %v1326_v42, 0.0 }
  0x8e   : > { %764 = vst.msk [vmem:[%s1324_s17 + $0x50] sm:$0xff] %vm579_vm2, %v1328_v43 }
  0x8f   : > { %v681_v32 = vsel %vm579_vm2, %v649_v17, 0.0 }
  0x93   : > { %v1343_v46 = vpop.f32.mrf.mxu2  ;;  %v1351_v47 = vpop.f32.mrf.mxu3 }
  0x94   : > { %v1336_v44 = vpop.f32.mrf.mxu0  ;;  %v1338_v45 = vpop.f32.mrf.mxu1  ;;  %766 = vst.msk [vmem:[%s1324_s17 + $0x60] sm:$0xff] %vm579_vm2, %v1343_v46 }
  0x95   : > { %755 = vst.msk [vmem:[%s1324_s17 + $0x8] sm:$0xff] %vm579_vm2, %v1336_v44  ;;  %v650_v12 = vmul.f32 %v1336_v44, %v1336_v44  ;;  %v581_v19 = vsel %vm579_vm2, %v1336_v44, 0.0 }
  0x96   : > { %765 = vst.msk [vmem:[%s1324_s17 + $0x58] sm:$0xff] %vm579_vm2, %v1338_v45  ;;  %v582_v33 = vadd.f32 %v581_v19, %v580_v22 }
  0x97   : > { %776 = vst.msk [vmem:[%s1324_s17 + $0xb0] sm:$0xff] %vm579_vm2, %v1351_v47  ;;  %v682_v23 = vsel %vm579_vm2, %v650_v12, 0.0 }
  0x98   : > { %v683_v39 = vadd.f32 %v682_v23, %v681_v32 }
  0x9b   : > { %v1368_v50 = vpop.f32.mrf.mxu2  ;;  %v1375_v51 = vpop.f32.mrf.mxu3 }
  0x9c   : > { %v1363_v48 = vpop.f32.mrf.mxu0  ;;  %v839_v49 = vpop.f32.mrf.mxu1  ;;  %767 = vst.msk [vmem:[%s1324_s17 + $0x68] sm:$0xff] %vm579_vm2, %v1368_v50 }
  0x9d   : > { %756 = vst.msk [vmem:[%s1324_s17 + $0x10] sm:$0xff] %vm579_vm2, %v1363_v48  ;;  %v884_v0 = vmul.f32 %v839_v49, %v839_v49  ;;  %v863_v2 = vsel %vm579_vm2, %v839_v49, 0.0  ;;  %v651_v20 = vmul.f32 %v1363_v48, %v1363_v48  ;;  %v583_v27 = vsel %vm579_vm2, %v1363_v48, 0.0 }
  0x9e   : > { %915 = vst.msk [vmem:[%s1361_s20] sm:$0xff] %vm579_vm2, %v839_v49  ;;  %v584_v40 = vadd.f32 %v583_v27, %v582_v33 }
  0x9f   : > { %777 = vst.msk [vmem:[%s1324_s17 + $0xb8] sm:$0xff] %vm579_vm2, %v1375_v51  ;;  %v892_v6 = vsel %vm579_vm2, %v884_v0, 0.0  ;;  %v684_v35 = vsel %vm579_vm2, %v651_v20, 0.0 }
  0xa3   : > { %v1385_v54 = vpop.f32.mrf.mxu2  ;;  %v1392_v55 = vpop.f32.mrf.mxu3 }
  0xa4   : > { %v1380_v52 = vpop.f32.mrf.mxu0  ;;  %v842_v53 = vpop.f32.mrf.mxu1  ;;  %768 = vst.msk [vmem:[%s1324_s17 + $0x70] sm:$0xff] %vm579_vm2, %v1385_v54 }
  0xa5   : > { %757 = vst.msk [vmem:[%s1324_s17 + $0x18] sm:$0xff] %vm579_vm2, %v1380_v52  ;;  %v885_v1 = vmul.f32 %v842_v53, %v842_v53  ;;  %v864_v3 = vsel %vm579_vm2, %v842_v53, 0.0  ;;  %v652_v28 = vmul.f32 %v1380_v52, %v1380_v52  ;;  %v585_v36 = vsel %vm579_vm2, %v1380_v52, 0.0 }
  0xa6   : > { %916 = vst.msk [vmem:[%s1361_s20 + $0x8] sm:$0xff] %vm579_vm2, %v842_v53  ;;  %v865_v10 = vadd.f32 %v864_v3, %v863_v2 }
  0xa7   : > { %778 = vst.msk [vmem:[%s1324_s17 + $0xc0] sm:$0xff] %vm579_vm2, %v1392_v55  ;;  %v893_v7 = vsel %vm579_vm2, %v885_v1, 0.0  ;;  %v686_v48 = vsel %vm579_vm2, %v652_v28, 0.0 }
  0xa8   : > { %v894_v13 = vadd.f32 %v893_v7, %v892_v6 }
  0xab   : > { %v1402_v58 = vpop.f32.mrf.mxu2  ;;  %v1409_v59 = vpop.f32.mrf.mxu3 }
  0xac   : > { %v1397_v56 = vpop.f32.mrf.mxu0  ;;  %v845_v57 = vpop.f32.mrf.mxu1  ;;  %769 = vst.msk [vmem:[%s1324_s17 + $0x78] sm:$0xff] %vm579_vm2, %v1402_v58 }
  0xad   : > { %758 = vst.msk [vmem:[%s1324_s17 + $0x20] sm:$0xff] %vm579_vm2, %v1397_v56  ;;  %v886_v8 = vmul.f32 %v845_v57, %v845_v57  ;;  %v866_v11 = vsel %vm579_vm2, %v845_v57, 0.0  ;;  %v653_v37 = vmul.f32 %v1397_v56, %v1397_v56  ;;  %v587_v49 = vsel %vm579_vm2, %v1397_v56, 0.0 }
  0xae   : > { %917 = vst.msk [vmem:[%s1361_s20 + $0x10] sm:$0xff] %vm579_vm2, %v845_v57  ;;  %v867_v18 = vadd.f32 %v866_v11, %v865_v10  ;;  %v685_v57 = vadd.f32 %v684_v35, %v683_v39  ;;  %v659_v35 = vmul.f32 %v1328_v43, %v1328_v43 }
  0xaf   : > { %779 = vst.msk [vmem:[%s1324_s17 + $0xc8] sm:$0xff] %vm579_vm2, %v1409_v59  ;;  %v895_v15 = vsel %vm579_vm2, %v886_v8, 0.0  ;;  %v688_v1 = vsel %vm579_vm2, %v653_v37, 0.0 }
  0xb0   : > { %v896_v24 = vadd.f32 %v895_v15, %v894_v13 }
  0xb3   : > { %v1419_v62 = vpop.f32.mrf.mxu2  ;;  %v1426_v63 = vpop.f32.mrf.mxu3 }
  0xb4   : > { %v1414_v60 = vpop.f32.mrf.mxu0  ;;  %v848_v61 = vpop.f32.mrf.mxu1  ;;  %770 = vst.msk [vmem:[%s1324_s17 + $0x80] sm:$0xff] %vm579_vm2, %v1419_v62 }
  0xb5   : > { %759 = vst.msk [vmem:[%s1324_s17 + $0x28] sm:$0xff] %vm579_vm2, %v1414_v60  ;;  %v887_v16 = vmul.f32 %v848_v61, %v848_v61  ;;  %v868_v21 = vsel %vm579_vm2, %v848_v61, 0.0  ;;  %v654_v41 = vmul.f32 %v1414_v60, %v1414_v60  ;;  %v589_v2 = vsel %vm579_vm2, %v1414_v60, 0.0 }
  0xb6   : > { %918 = vst.msk [vmem:[%s1361_s20 + $0x18] sm:$0xff] %vm579_vm2, %v848_v61  ;;  %v869_v34 = vadd.f32 %v868_v21, %v867_v18  ;;  %v586_v61 = vadd.f32 %v585_v36, %v584_v40 }
  0xb7   : > { %780 = vst.msk [vmem:[%s1324_s17 + $0xd0] sm:$0xff] %vm579_vm2, %v1426_v63  ;;  %v897_v29 = vsel %vm579_vm2, %v887_v16, 0.0  ;;  %v690_v7 = vsel %vm579_vm2, %v654_v41, 0.0 }
  0xb8   : > { %v898_v42 = vadd.f32 %v897_v29, %v896_v24  ;;  %v588_v6 = vadd.f32 %v587_v49, %v586_v61 }
  0xba   : > { %v590_v18 = vadd.f32 %v589_v2, %v588_v6 }
  0xbb   : > { %v1440_v9 = vpop.f32.mrf.mxu2  ;;  %v1450_v14 = vpop.f32.mrf.mxu3 }
  0xbc   : > { %v1433_v4 = vpop.f32.mrf.mxu0  ;;  %v851_v5 = vpop.f32.mrf.mxu1  ;;  %771 = vst.msk [vmem:[%s1324_s17 + $0x88] sm:$0xff] %vm579_vm2, %v1440_v9 }
  0xbd   : > { %760 = vst.msk [vmem:[%s1324_s17 + $0x30] sm:$0xff] %vm579_vm2, %v1433_v4  ;;  %v888_v30 = vmul.f32 %v851_v5, %v851_v5  ;;  %v870_v38 = vsel %vm579_vm2, %v851_v5, 0.0  ;;  %v655_v3 = vmul.f32 %v1433_v4, %v1433_v4  ;;  %v591_v12 = vsel %vm579_vm2, %v1433_v4, 0.0 }
  0xbe   : > { %919 = vst.msk [vmem:[%s1361_s20 + $0x20] sm:$0xff] %vm579_vm2, %v851_v5  ;;  %v871_v0 = vadd.f32 %v870_v38, %v869_v34  ;;  %v687_v5 = vadd.f32 %v686_v48, %v685_v57  ;;  %v592_v24 = vadd.f32 %v591_v12, %v590_v18  ;;  %v603_v18 = vsel %vm579_vm2, %v1343_v46, 0.0 }
  0xbf   : > { %781 = vst.msk [vmem:[%s1324_s17 + $0xd8] sm:$0xff] %vm579_vm2, %v1450_v14  ;;  %v899_v52 = vsel %vm579_vm2, %v888_v30, 0.0  ;;  %v692_v20 = vsel %vm579_vm2, %v655_v3, 0.0 }
  0xc0   : > { %v900_v8 = vadd.f32 %v899_v52, %v898_v42  ;;  %v689_v17 = vadd.f32 %v688_v1, %v687_v5  ;;  %v660_v1 = vmul.f32 %v1338_v45, %v1338_v45 }
  0xc2   : > { %v691_v23 = vadd.f32 %v690_v7, %v689_v17  ;;  %v702_v17 = vsel %vm579_vm2, %v660_v1, 0.0 }
  0xc3   : > { %v1473_v31 = vpop.f32.mrf.mxu2  ;;  %v1489_v44 = vpop.f32.mrf.mxu3 }
  0xc4   : > { %v504_v25 = vpop.f32.mrf.mxu0  ;;  %v854_v26 = vpop.f32.mrf.mxu1  ;;  %772 = vst.msk [vmem:[%s1324_s17 + $0x90] sm:$0xff] %vm579_vm2, %v1473_v31 }
  0xc5   : > { %761 = vst.msk [vmem:[%s1324_s17 + $0x38] sm:$0xff] %vm579_vm2, %v504_v25  ;;  %v889_v53 = vmul.f32 %v854_v26, %v854_v26  ;;  %v872_v56 = vsel %vm579_vm2, %v854_v26, 0.0  ;;  %v656_v13 = vmul.f32 %v504_v25, %v504_v25  ;;  %v593_v21 = vsel %vm579_vm2, %v504_v25, 0.0 }
  0xc6   : > { %920 = vst.msk [vmem:[%s1361_s20 + $0x28] sm:$0xff] %vm579_vm2, %v854_v26  ;;  %v873_v19 = vadd.f32 %v872_v56, %v871_v0  ;;  %v693_v25 = vadd.f32 %v692_v20, %v691_v23  ;;  %v594_v32 = vadd.f32 %v593_v21, %v592_v24  ;;  %v599_v0 = vsel %vm579_vm2, %v1328_v43, 0.0 }
  0xc7   : > { %782 = vst.msk [vmem:[%s1324_s17 + $0xe0] sm:$0xff] %vm579_vm2, %v1489_v44  ;;  %v901_v60 = vsel %vm579_vm2, %v889_v53, 0.0  ;;  %v694_v28 = vsel %vm579_vm2, %v656_v13, 0.0  ;;  %v601_v43 = vsel %vm579_vm2, %v1338_v45, 0.0  ;;  %v605_v23 = vsel %vm579_vm2, %v1368_v50, 0.0 }
  0xc8   : > { %v902_v26 = vadd.f32 %v901_v60, %v900_v8  ;;  %v695_v36 = vadd.f32 %v694_v28, %v693_v25  ;;  %v663_v24 = vmul.f32 %v1385_v54, %v1385_v54 }
  0xcb   : > { %v1510_v16 = vpop.f32.mrf.mxu2  ;;  %v1520_v27 = vpop.f32.mrf.mxu3 }
  0xcc   : > { %v507_v10 = vpop.f32.mrf.mxu0  ;;  %v857_v11 = vpop.f32.mrf.mxu1  ;;  %773 = vst.msk [vmem:[%s1324_s17 + $0x98] sm:$0xff] %vm579_vm2, %v1510_v16 }
  0xcd   : > { %762 = vst.msk [vmem:[%s1324_s17 + $0x40] sm:$0xff] %vm579_vm2, %v507_v10  ;;  %v890_v15 = vmul.f32 %v857_v11, %v857_v11  ;;  %v657_v22 = vmul.f32 %v507_v10, %v507_v10  ;;  %v874_v4 = vsel %vm579_vm2, %v857_v11, 0.0  ;;  %v595_v29 = vsel %vm579_vm2, %v507_v10, 0.0 }
  0xce   : > { %921 = vst.msk [vmem:[%s1361_s20 + $0x30] sm:$0xff] %vm579_vm2, %v857_v11  ;;  %v875_v33 = vadd.f32 %v874_v4, %v873_v19  ;;  %v596_v37 = vadd.f32 %v595_v29, %v594_v32  ;;  %v700_v10 = vsel %vm579_vm2, %v659_v35, 0.0  ;;  %v661_v11 = vmul.f32 %v1343_v46, %v1343_v46 }
  0xcf   : > { %v903_v30 = vsel %vm579_vm2, %v890_v15, 0.0  ;;  %783 = vst.msk [vmem:[%s1324_s17 + $0xe8] sm:$0xff] %vm579_vm2, %v1520_v27  ;;  %v696_v34 = vsel %vm579_vm2, %v657_v22, 0.0  ;;  %v662_v19 = vmul.f32 %v1368_v50, %v1368_v50  ;;  %v607_v50 = vsel %vm579_vm2, %v1385_v54, 0.0 }
  0xd0   : > { %v904_v38 = vadd.f32 %v903_v30, %v902_v26  ;;  %v697_v53 = vadd.f32 %v696_v34, %v695_v36  ;;  %v704_v4 = vsel %vm579_vm2, %v661_v11, 0.0  ;;  %v664_v26 = vmul.f32 %v1402_v58, %v1402_v58 }
  0xd1   : > { %v706_v32 = vsel %vm579_vm2, %v662_v19, 0.0 }
  0xd2   : > { %v710_v54 = vsel %vm579_vm2, %v664_v26, 0.0  ;;  %v672_v26 = vmul.f32 %v1375_v51, %v1375_v51 }
  0xd3   : > { %v1535_v52 = vpop.f32.mrf.mxu2  ;;  %v1548_v8 = vpop.f32.mrf.mxu3 }
  0xd4   : > { %v510_v39 = vpop.f32.mrf.mxu0  ;;  %v860_v40 = vpop.f32.mrf.mxu1  ;;  %774 = vst.msk [vmem:[%s1324_s17 + $0xa0] sm:$0xff] %vm579_vm2, %v1535_v52 }
  0xd5   : > { %v597_v41 = vsel %vm579_vm2, %v510_v39, 0.0  ;;  %v658_v42 = vmul.f32 %v510_v39, %v510_v39  ;;  %763 = vst.msk [vmem:[%s1324_s17 + $0x48] sm:$0xff] %vm579_vm2, %v510_v39  ;;  %v876_v48 = vsel %vm579_vm2, %v860_v40, 0.0  ;;  %v891_v49 = vmul.f32 %v860_v40, %v860_v40 }
  0xd6   : > { %v598_v57 = vadd.f32 %v597_v41, %v596_v37  ;;  %v877_v61 = vadd.f32 %v876_v48, %v875_v33  ;;  %922 = vst.msk [vmem:[%s1361_s20 + $0x38] sm:$0xff] %vm579_vm2, %v860_v40  ;;  %v609_v39 = vsel %vm579_vm2, %v1402_v58, 0.0  ;;  %v665_v40 = vmul.f32 %v1419_v62, %v1419_v62 }
  0xd7   : > { %v698_v2 = vsel %vm579_vm2, %v658_v42, 0.0  ;;  %v905_v3 = vsel %vm579_vm2, %v891_v49, 0.0  ;;  %784 = vst.msk [vmem:[%s1324_s17 + $0xf0] sm:$0xff] %vm579_vm2, %v1548_v8  ;;  %v611_v49 = vsel %vm579_vm2, %v1419_v62, 0.0  ;;  %v667_v62 = vmul.f32 %v1473_v31, %v1473_v31 }
  0xd8   : > { %v600_v56 = vadd.f32 %v599_v0, %v598_v57  ;;  %v699_v5 = vadd.f32 %v698_v2, %v697_v53  ;;  %v878_v6 = vrot.slane %v877_v61, 4  ;;  %v906_v7 = vadd.f32 %v905_v3, %v904_v38 }
  0xd9   : > { %v708_v38 = vsel %vm579_vm2, %v663_v24, 0.0  ;;  %v666_v53 = vmul.f32 %v1440_v9, %v1440_v9  ;;  %v712_v1 = vsel %vm579_vm2, %v665_v40, 0.0  ;;  %v613_v2 = vsel %vm579_vm2, %v1440_v9, 0.0 }
  0xda   : > { %v602_v12 = vadd.f32 %v601_v43, %v600_v56  ;;  %v701_v13 = vadd.f32 %v700_v10, %v699_v5  ;;  %v879_v60 = vadd.f32 %v878_v6, %v877_v61  ;;  %v907_v15 = vrot.slane %v906_v7, 4 }
  0xdb   : > { %v546_v28 = vpop.f32.mrf.mxu2  ;;  %v1575_v37 = vpop.f32.mrf.mxu3  ;;  %v714_v6 = vsel %vm579_vm2, %v666_v53, 0.0  ;;  %v668_v10 = vmul.f32 %v1510_v16, %v1510_v16  ;;  %v716_v9 = vsel %vm579_vm2, %v667_v62, 0.0  ;;  %v623_v24 = vsel %vm579_vm2, %v1351_v47, 0.0 }
  0xdc   : > { %v604_v45 = vadd.f32 %v603_v18, %v602_v12  ;;  %v703_v20 = vadd.f32 %v702_v17, %v701_v13  ;;  %v880_v21 = vrot.slane %v879_v60, 2  ;;  %v908_v22 = vadd.f32 %v907_v15, %v906_v7  ;;  %775 = vst.msk [vmem:[%s1324_s17 + $0xa8] sm:$0xff] %vm579_vm2, %v546_v28 }
  0xdd   : > { %785 = vst.msk [vmem:[%s1324_s17 + $0xf8] sm:$0xff] %vm579_vm2, %v1575_v37  ;;  %v615_v7 = vsel %vm579_vm2, %v1473_v31, 0.0  ;;  %v617_v12 = vsel %vm579_vm2, %v1510_v16, 0.0  ;;  %v669_v13 = vmul.f32 %v1535_v52, %v1535_v52  ;;  %v718_v31 = vsel %vm579_vm2, %v668_v10, 0.0 }
  0xde   : > { %v606_v46 = vadd.f32 %v605_v23, %v604_v45  ;;  %v705_v29 = vadd.f32 %v704_v4, %v703_v20  ;;  %v881_v30 = vadd.f32 %v880_v21, %v879_v60  ;;  %v909_v25 = vrot.slane %v908_v22, 2 }
  0xdf   : > { %v670_v60 = vmul.f32 %v546_v28, %v546_v28  ;;  %v619_v18 = vsel %vm579_vm2, %v1535_v52, 0.0  ;;  %v621_v19 = vsel %vm579_vm2, %v546_v28, 0.0  ;;  %v671_v21 = vmul.f32 %v1351_v47, %v1351_v47 }
  0xe0   : > { %v707_v33 = vadd.f32 %v706_v32, %v705_v29  ;;  %v608_v34 = vadd.f32 %v607_v50, %v606_v46  ;;  %v882_v35 = vrot.slane %v881_v30, 1  ;;  %v910_v36 = vadd.f32 %v909_v25, %v908_v22 }
  0xe1   : > { %v720_v16 = vsel %vm579_vm2, %v669_v13, 0.0  ;;  %v722_v22 = vsel %vm579_vm2, %v670_v60, 0.0  ;;  %v724_v28 = vsel %vm579_vm2, %v671_v21, 0.0  ;;  %v625_v29 = vsel %vm579_vm2, %v1375_v51, 0.0 }
  0xe2   : > { %v610_v41 = vadd.f32 %v609_v39, %v608_v34  ;;  %v709_v42 = vadd.f32 %v708_v38, %v707_v33  ;;  %v911_v48 = vrot.slane %v910_v36, 1  ;;  %v883_v61 = vadd.f32 %v882_v35, %v881_v30 }
  0xe3   : > { %v673_v30 = vmul.f32 %v1392_v55, %v1392_v55  ;;  %v726_v50 = vsel %vm579_vm2, %v672_v26, 0.0  ;;  %v627_v47 = vsel %vm579_vm2, %v1392_v55, 0.0  ;;  %v674_v33 = vmul.f32 %v1409_v59, %v1409_v59 }
  0xe4   : > { %v612_v58 = vadd.f32 %v611_v49, %v610_v41  ;;  %v711_v57 = vadd.f32 %v710_v54, %v709_v42  ;;  %v912_v0 = vadd.f32 %v911_v48, %v910_v36  ;;  %v629_v51 = vsel %vm579_vm2, %v1409_v59, 0.0 }
  0xe5   : > { %v728_v36 = vsel %vm579_vm2, %v673_v30, 0.0  ;;  %v675_v38 = vmul.f32 %v1426_v63, %v1426_v63  ;;  %v730_v54 = vsel %vm579_vm2, %v674_v33, 0.0  ;;  %v631_v55 = vsel %vm579_vm2, %v1426_v63, 0.0 }
  0xe6   : > { %v614_v3 = vadd.f32 %v613_v2, %v612_v58  ;;  %v713_v56 = vadd.f32 %v712_v1, %v711_v57  ;;  %v913_v5 = vsel %vm750_vm3, %v883_v61, %v912_v0  ;;  %v676_v41 = vmul.f32 %v1450_v14, %v1450_v14 }
  0xe7   : > { %914 = vst.msk [vmem:[%s331_s26] sm:$0x3] %vm752_vm4, %v913_v5  ;;  %v732_v49 = vsel %vm579_vm2, %v675_v38, 0.0  ;;  %v633_v59 = vsel %vm579_vm2, %v1450_v14, 0.0  ;;  %v677_v53 = vmul.f32 %v1489_v44, %v1489_v44  ;;  %v635_v63 = vsel %vm579_vm2, %v1489_v44, 0.0 }
  0xe8   : > { %v616_v43 = vadd.f32 %v615_v7, %v614_v3  ;;  %v715_v11 = vadd.f32 %v714_v6, %v713_v56  ;;  %v734_v61 = vsel %vm579_vm2, %v676_v41, 0.0  ;;  %v678_v0 = vmul.f32 %v1520_v27, %v1520_v27 }
  0xe9   : > { %v736_v62 = vsel %vm579_vm2, %v677_v53, 0.0  ;;  %v637_v14 = vsel %vm579_vm2, %v1520_v27, 0.0  ;;  %v679_v3 = vmul.f32 %v1548_v8, %v1548_v8  ;;  %v680_v56 = vmul.f32 %v1575_v37, %v1575_v37 }
  0xea   : > { %v717_v15 = vadd.f32 %v716_v9, %v715_v11  ;;  %v618_v17 = vadd.f32 %v617_v12, %v616_v43  ;;  %v738_v44 = vsel %vm579_vm2, %v678_v0, 0.0  ;;  %v639_v7 = vsel %vm579_vm2, %v1548_v8, 0.0 }
  0xeb   : > { %v641_v10 = vsel %vm579_vm2, %v1575_v37, 0.0  ;;  %v740_v27 = vsel %vm579_vm2, %v679_v3, 0.0  ;;  %v742_v9 = vsel %vm579_vm2, %v680_v56, 0.0 }
  0xec   : > { %v719_v45 = vadd.f32 %v718_v31, %v717_v15  ;;  %v620_v20 = vadd.f32 %v619_v18, %v618_v17 }
  0xee   : > { %v721_v4 = vadd.f32 %v720_v16, %v719_v45  ;;  %v622_v23 = vadd.f32 %v621_v19, %v620_v20 }
  0xf0   : > { %v624_v52 = vadd.f32 %v623_v24, %v622_v23  ;;  %v723_v46 = vadd.f32 %v722_v22, %v721_v4 }
  0xf2   : > { %v626_v25 = vadd.f32 %v625_v29, %v624_v52  ;;  %v725_v32 = vadd.f32 %v724_v28, %v723_v46 }
  0xf4   : > { %v628_v34 = vadd.f32 %v627_v47, %v626_v25  ;;  %v727_v35 = vadd.f32 %v726_v50, %v725_v32 }
  0xf6   : > { %v630_v39 = vadd.f32 %v629_v51, %v628_v34  ;;  %v729_v40 = vadd.f32 %v728_v36, %v727_v35 }
  0xf8   : > { %v731_v42 = vadd.f32 %v730_v54, %v729_v40  ;;  %v632_v48 = vadd.f32 %v631_v55, %v630_v39 }
  0xfa   : > { %v634_v58 = vadd.f32 %v633_v59, %v632_v48  ;;  %v733_v57 = vadd.f32 %v732_v49, %v731_v42 }
  0xfc   : > { %v636_v1 = vadd.f32 %v635_v63, %v634_v58  ;;  %v735_v2 = vadd.f32 %v734_v61, %v733_v57 }
  0xfe   : > { %v638_v5 = vadd.f32 %v637_v14, %v636_v1  ;;  %v737_v6 = vadd.f32 %v736_v62, %v735_v2 }
 0x100   : > { %v739_v43 = vadd.f32 %v738_v44, %v737_v6  ;;  %v640_v11 = vadd.f32 %v639_v7, %v638_v5 }
 0x102   : > { %v741_v12 = vadd.f32 %v740_v27, %v739_v43  ;;  %v642_v13 = vadd.f32 %v641_v10, %v640_v11 }
 0x104   : > { %v643_v60 = vrot.slane %v642_v13, 4  ;;  %v743_v15 = vadd.f32 %v742_v9, %v741_v12 }
 0x106   : > { %v644_v17 = vadd.f32 %v643_v60, %v642_v13  ;;  %v744_v31 = vrot.slane %v743_v15, 4 }
 0x108   : > { %v645_v18 = vrot.slane %v644_v17, 2  ;;  %v745_v19 = vadd.f32 %v744_v31, %v743_v15 }
 0x10a   : > { %v646_v45 = vadd.f32 %v645_v18, %v644_v17  ;;  %v746_v8 = vrot.slane %v745_v19, 2 }
 0x10c   : > { %v647_v20 = vrot.slane %v646_v45, 1  ;;  %v747_v21 = vadd.f32 %v746_v8, %v745_v19 }
 0x10e   : > { %v748_v37 = vrot.slane %v747_v21, 1  ;;  %v648_v16 = vadd.f32 %v647_v20, %v646_v45 }
 0x110   : > { %v749_v22 = vadd.f32 %v748_v37, %v747_v21 }
 0x112   : > { %v751_v4 = vsel %vm750_vm3, %v648_v16, %v749_v22 }
 0x113   : > { %753 = vst.msk [vmem:[%s322_s29] sm:$0x3] %vm752_vm4, %v751_v4 }
 0x114 PF: > { %s18_s24 = sadd.s32 1, %s1165_s24  }
 0x115   : > { %p15_p4 = scmp.ge.s32.totalorder %s18_s24, 4  }
 0x117   :  { %17 = sbr.rel (!%p15_p4) target bundleno = 1 (0x1), region = 105 }

// kernel: bottleneck_forward.5
= control target key start
LH: loop header
LB: loop body
LE: loop exit
PB: predicated region body
PF: predicated region fallthrough
CT: control target
= control target key end

     0   :  { %s1194_s18 = smov 0   ;;  %s1710_s0 = inlined_call_operand.vmem [shape: f32[2,16,16,8], index: 0, kind: input, shape index: {}]   ;;  %s1711_s1 = inlined_call_operand.vmem [shape: f32[1,8], index: 1, kind: input, shape index: {}]   ;;  %s1712_s2 = inlined_call_operand.vmem [shape: f32[1,8], index: 2, kind: input, shape index: {}]   ;;  %s1713_s3 = inlined_call_operand.vmem [shape: f32[72,8], index: 3, kind: input, shape index: {}]   ;;  %s1714_s4 = inlined_call_operand.vmem [shape: f32[2,64,8], index: 4, kind: output, shape index: {0}]   ;;  %s1715_s5 = inlined_call_operand.vmem [shape: f32[2,2,8], index: 5, kind: output, shape index: {1}]  }
   0x1 LB: > { %s1079_s19 = sadd.s32 4294967295, %s1153_s18   ;;  %p1083_p0 = scmp.ge.s32.totalorder %s1153_s18, 1  ;;  %s1153_s18 = sphi %s1194_s18, %s16_s18  }
   0x2   : > { %p190_p1 = scmp.lt.s32.totalorder %s1153_s18, 3 }
   0x4   : > { %p191_p2 = pnand %p1083_p0, %p190_p1 }
   0x5   : > { %p222_p3 = scmp.lt.s32.totalorder (!%p191_p2), %s1079_s19, 1  ;;  %s1156_s22 = smov (!%p191_p2), 8  }
   0x6   : > { %194 = sbr.rel (%p191_p2) target bundleno = 453 (0x1c5), region = 36  ;;  %s1157_s29 = smov (!%p191_p2), 16  }
   0x7   : > { %s1158_s30 = smov (!%p191_p2), 24   ;;  %s1159_s6 = smov (!%p191_p2), 32  }
   0x8   : > { %s1160_s7 = smov (!%p191_p2), 40   ;;  %s1161_s8 = smov (!%p191_p2), 48  }
   0x9   : > { %s1162_s9 = smov (!%p191_p2), 56   ;;  %s1163_s10 = smov (!%p191_p2), 64  }
   0xb   : > { %vm405_vm0 = vcmask 1040384   ;;  %v1155_v0 = vmov 0.0   ;;  %s1717_s19 = smov (!%p222_p3, %s1079_s19), 1  ;;  %v1210_v4 = vld [vmem:[%s1711_s1] ss:$0 sm:$0xff]  ;;  %vm490_vm1 = vcmask 1046528  }
   0xc   : > { %v406_v1 = vrot.slane %v1155_v0, 7  ;;  %s1099_s23 = sshll.u32 %s1717_s19, 8  ;;  %v1223_v6 = vld [vmem:[%s1712_s2] ss:$0 sm:$0xff]  ;;  %vm785_vm2 = vcmask 64512   ;;  %vm794_vm3 = vcmask 130048  }
   0xd   : > { %s1218_s26 = scalar_lea.vmem %s1710_s0, %s1099_s23  ;;  %vm803_vm4 = vcmask 195584   ;;  %vm812_vm5 = vcmask 261120   ;;  %vm821_vm6 = vcmask 326656   ;;  %vm830_vm7 = vcmask 392192  }
   0xe   : > { %v491_v2 = vrot.slane %v406_v1, 1  ;;  %v1203_v3 = vsel %vm405_vm0, 0.0, %v406_v1  ;;  %v252_v7 = vld [vmem:[%s1218_s26 + $0x80] sm:$0xff]  ;;  %v242_v8 = vld [vmem:[%s1218_s26 + $0x30] sm:$0xff]  ;;  %v243_v9 = vld [vmem:[%s1218_s26 + $0x38] sm:$0xff]  ;;  %vm839_vm8 = vcmask 457728  }
   0xf   : > { %v523_v5 = vrot.slane %v1203_v3, 1  ;;  %v288_v10 = vmul.f32 %v1210_v4, %v252_v7  ;;  %v278_v11 = vmul.f32 %v1210_v4, %v242_v8  ;;  %v279_v12 = vmul.f32 %v1210_v4, %v243_v9  ;;  %v238_v13 = vld [vmem:[%s1218_s26 + $0x10] sm:$0xff]  ;;  %v239_v14 = vld [vmem:[%s1218_s26 + $0x18] sm:$0xff]  ;;  %v260_v15 = vld [vmem:[%s1218_s26 + $0xc0] sm:$0xff] }
  0x10   : > { %593 = vrot.lane.b32.xlu0 %v491_v2, %s1156_s22  ;;  %v274_v17 = vmul.f32 %v1210_v4, %v238_v13  ;;  %v275_v18 = vmul.f32 %v1210_v4, %v239_v14  ;;  %v296_v19 = vmul.f32 %v1210_v4, %v260_v15  ;;  %v253_v20 = vld [vmem:[%s1218_s26 + $0x88] sm:$0xff]  ;;  %v246_v25 = vld [vmem:[%s1218_s26 + $0x50] sm:$0xff]  ;;  %v247_v33 = vld [vmem:[%s1218_s26 + $0x58] sm:$0xff]  ;;  %vm848_vm9 = vcmask 523264  }
  0x11   : > { %v524_v16 = vsel %vm490_vm1, %v523_v5, %v491_v2  ;;  %v324_v21 = vadd.f32 %v1223_v6, %v288_v10  ;;  %v314_v22 = vadd.f32 %v1223_v6, %v278_v11  ;;  %v315_v23 = vadd.f32 %v1223_v6, %v279_v12  ;;  %v261_v58 = vld [vmem:[%s1218_s26 + $0xc8] sm:$0xff]  ;;  %v236_v59 = vld [vmem:[%s1218_s26] sm:$0xff] }
  0x12   : > { %v289_v24 = vmul.f32 %v1210_v4, %v253_v20  ;;  %v310_v26 = vadd.f32 %v1223_v6, %v274_v17  ;;  %v311_v27 = vadd.f32 %v1223_v6, %v275_v18  ;;  %v332_v28 = vadd.f32 %v1223_v6, %v296_v19  ;;  %v237_v63 = vld [vmem:[%s1218_s26 + $0x8] sm:$0xff] }
  0x13   : > { %v356_v29 = vmax.f32 %v324_v21, 0.0  ;;  %v346_v30 = vmax.f32 %v314_v22, 0.0  ;;  %v347_v31 = vmax.f32 %v315_v23, 0.0  ;;  %v282_v37 = vmul.f32 %v1210_v4, %v246_v25  ;;  %v256_v21 = vld [vmem:[%s1218_s26 + $0xa0] sm:$0xff] }
  0x14   : > { %v325_v32 = vadd.f32 %v1223_v6, %v289_v24  ;;  %v342_v34 = vmax.f32 %v310_v26, 0.0  ;;  %v343_v35 = vmax.f32 %v311_v27, 0.0  ;;  %v364_v36 = vmax.f32 %v332_v28, 0.0 }
  0x15   : > { %v432_v38 = vrot.slane %v356_v29, 7  ;;  %v417_v39 = vrot.slane %v346_v30, 7  ;;  %v418_v40 = vrot.slane %v347_v31, 7  ;;  %v283_v45 = vmul.f32 %v1210_v4, %v247_v33  ;;  %v244_v31 = vld [vmem:[%s1218_s26 + $0x40] sm:$0xff] }
  0x16   : > { %v357_v41 = vmax.f32 %v325_v32, 0.0  ;;  %v411_v42 = vrot.slane %v342_v34, 7  ;;  %v412_v43 = vrot.slane %v343_v35, 7  ;;  %v444_v44 = vrot.slane %v364_v36, 7  ;;  %v257_v35 = vld [vmem:[%s1218_s26 + $0xa8] sm:$0xff] }
  0x17   : > { %v482_v46 = vsel %vm405_vm0, 0.0, %v432_v38  ;;  %v419_v47 = vsel %vm405_vm0, %v417_v39, %v418_v40  ;;  %v1255_v48 = vsel %vm405_vm0, 0.0, %v417_v39  ;;  %v318_v53 = vadd.f32 %v1223_v6, %v282_v37 }
  0x18   : > { %617 = vrot.lane.b32.xlu0 %v524_v16, %s1157_s29  ;;  %v433_v49 = vrot.slane %v357_v41, 7  ;;  %641 = vrot.lane.b32.xlu1 %v482_v46, %s1158_s30  ;;  %v503_v50 = vrot.slane %v419_v47, 1  ;;  %v531_v51 = vrot.slane %v1255_v48, 1  ;;  %v413_v52 = vsel %vm405_vm0, %v411_v42, %v412_v43 }
  0x19   : > { %v497_v54 = vrot.slane %v413_v52, 1  ;;  %v498_v55 = vrot.slane %v412_v43, 1  ;;  %v1273_v61 = vsel %vm405_vm0, 0.0, %v411_v42  ;;  %v319_v62 = vadd.f32 %v1223_v6, %v283_v45 }
  0x1a   : > { %v434_v56 = vsel %vm405_vm0, %v432_v38, %v433_v49  ;;  %v1263_v57 = vsel %vm490_vm1, %v531_v51, %v503_v50  ;;  %v1280_v0 = vsel %vm405_vm0, 0.0, %v444_v44  ;;  %v540_v2 = vrot.slane %v433_v49, 1  ;;  %v264_v51 = vld [vmem:[%s1218_s26 + $0xe0] sm:$0xff] }
  0x1b   : > { %625 = vrot.lane.b32.xlu2 %v1263_v57, %s1157_s29  ;;  %v1270_v60 = vsel %vm490_vm1, %v497_v54, %v498_v55  ;;  %v539_v1 = vrot.slane %v434_v56, 1  ;;  %v350_v5 = vmax.f32 %v318_v53, 0.0  ;;  %v527_v7 = vrot.slane %v1273_v61, 1 }
  0x1c   : > { %v351_v8 = vmax.f32 %v319_v62, 0.0  ;;  %v297_v9 = vmul.f32 %v1210_v4, %v261_v58  ;;  %v272_v10 = vmul.f32 %v1210_v4, %v236_v59  ;;  %v273_v12 = vmul.f32 %v1210_v4, %v237_v63 }
  0x1d   : > { %v423_v11 = vrot.slane %v350_v5, 7  ;;  %v541_v16 = vsel %vm490_vm1, %v539_v1, %v540_v2  ;;  %v1293_v18 = vsel %vm490_vm1, %v527_v7, %v497_v54  ;;  %v504_v19 = vrot.slane %v418_v40, 1  ;;  %v245_v7 = vld [vmem:[%s1218_s26 + $0x48] sm:$0xff] }
  0x1e   : > { %v424_v13 = vrot.slane %v351_v8, 7  ;;  %v333_v14 = vadd.f32 %v1223_v6, %v297_v9  ;;  %v308_v15 = vadd.f32 %v1223_v6, %v272_v10  ;;  %v309_v17 = vadd.f32 %v1223_v6, %v273_v12 }
  0x1f   : > { %v571_v26 = vrot.slane %v482_v46, 1  ;;  %v292_v27 = vmul.f32 %v1210_v4, %v256_v21  ;;  %v1304_v28 = vsel %vm490_vm1, %v503_v50, %v504_v19  ;;  %v280_v38 = vmul.f32 %v1210_v4, %v244_v31  ;;  %v254_v31 = vld [vmem:[%s1218_s26 + $0x90] sm:$0xff] }
  0x20   : > { %597 = vrot.lane.b32.xlu0 %v1270_v60, %s1156_s22  ;;  %649 = vrot.lane.b32.xlu1 %v1280_v0, %s1158_s30  ;;  %v365_v20 = vmax.f32 %v333_v14, 0.0  ;;  %v1297_v22 = vsel %vm405_vm0, %v423_v11, %v424_v13  ;;  %v340_v23 = vmax.f32 %v308_v15, 0.0  ;;  %v341_v24 = vmax.f32 %v309_v17, 0.0 }
  0x21   : > { %v509_v29 = vrot.slane %v1297_v22, 1  ;;  %v510_v30 = vrot.slane %v424_v13, 1  ;;  %v572_v36 = vsel %vm490_vm1, %v571_v26, %v539_v1  ;;  %v328_v37 = vadd.f32 %v1223_v6, %v292_v27  ;;  %v265_v13 = vld [vmem:[%s1218_s26 + $0xe8] sm:$0xff] }
  0x22   : > { %v445_v25 = vrot.slane %v365_v20, 7  ;;  %v408_v33 = vrot.slane %v340_v23, 7  ;;  %v409_v34 = vrot.slane %v341_v24, 7  ;;  %v293_v42 = vmul.f32 %v1210_v4, %v257_v35 }
  0x23   : > { %665 = vrot.lane.b32.xlu2 %v541_v16, %s1159_s6  ;;  %v1316_v39 = vsel %vm490_vm1, %v509_v29, %v510_v30  ;;  %v316_v45 = vadd.f32 %v1223_v6, %v280_v38  ;;  %v300_v58 = vmul.f32 %v1210_v4, %v264_v51  ;;  %v579_v59 = vrot.slane %v1280_v0, 1 }
  0x24   : > { %v446_v32 = vsel %vm405_vm0, %v444_v44, %v445_v25  ;;  %v552_v41 = vrot.slane %v445_v25, 1  ;;  %v410_v43 = vsel %vm405_vm0, %v408_v33, %v409_v34  ;;  %v360_v44 = vmax.f32 %v328_v37, 0.0 }
  0x25   : > { %v551_v40 = vrot.slane %v446_v32, 1  ;;  %v494_v47 = vrot.slane %v410_v43, 1  ;;  %v495_v49 = vrot.slane %v409_v34, 1  ;;  %v329_v50 = vadd.f32 %v1223_v6, %v293_v42  ;;  %v255_v32 = vld [vmem:[%s1218_s26 + $0x98] sm:$0xff] }
  0x26   : > { %v1329_v52 = vsel %vm405_vm0, 0.0, %v408_v33  ;;  %v438_v53 = vrot.slane %v360_v44, 7  ;;  %v348_v55 = vmax.f32 %v316_v45, 0.0  ;;  %v1338_v62 = vsel %vm405_vm0, 0.0, %v423_v11 }
  0x27   : > { %v553_v46 = vsel %vm490_vm1, %v551_v40, %v552_v41  ;;  %v496_v54 = vsel %vm490_vm1, %v494_v47, %v495_v49  ;;  %v361_v56 = vmax.f32 %v329_v50, 0.0  ;;  %v336_v5 = vadd.f32 %v1223_v6, %v300_v58 }
  0x28   : > { %621 = vrot.lane.b32.xlu0 %v1293_v18, %s1157_s29  ;;  %601 = vrot.lane.b32.xlu1 %v1304_v28, %s1156_s22  ;;  %v484_v63 = vsel %vm405_vm0, 0.0, %v438_v53  ;;  %v420_v1 = vrot.slane %v348_v55, 7  ;;  %v580_v8 = vsel %vm490_vm1, %v579_v59, %v551_v40  ;;  %v535_v0 = vrot.slane %v1338_v62, 1  ;;  %v241_v40 = vld [vmem:[%s1218_s26 + $0x28] sm:$0xff] }
  0x29   : > { %v439_v2 = vrot.slane %v361_v56, 7  ;;  %v368_v11 = vmax.f32 %v336_v5, 0.0  ;;  %v281_v12 = vmul.f32 %v1210_v4, %v245_v7  ;;  %v301_v20 = vmul.f32 %v1210_v4, %v265_v13  ;;  %v248_v13 = vld [vmem:[%s1218_s26 + $0x60] sm:$0xff] }
  0x2a   : > { %v1347_v9 = vsel %vm405_vm0, 0.0, %v420_v1  ;;  %v1356_v16 = vsel %vm490_vm1, %v535_v0, %v509_v29  ;;  %v525_v22 = vrot.slane %v1329_v52, 1  ;;  %v240_v29 = vld [vmem:[%s1218_s26 + $0x20] sm:$0xff]  ;;  %v575_v34 = vrot.slane %v484_v63, 1 }
  0x2b   : > { %689 = vrot.lane.b32.xlu2 %v572_v36, %s1160_s7  ;;  %v440_v10 = vsel %vm405_vm0, %v438_v53, %v439_v2  ;;  %v546_v15 = vrot.slane %v439_v2, 1  ;;  %v450_v17 = vrot.slane %v368_v11, 7  ;;  %v317_v19 = vadd.f32 %v1223_v6, %v281_v12 }
  0x2c   : > { %v545_v14 = vrot.slane %v440_v10, 1  ;;  %v337_v25 = vadd.f32 %v1223_v6, %v301_v20  ;;  %v526_v26 = vsel %vm490_vm1, %v525_v22, %v494_v47  ;;  %v276_v33 = vmul.f32 %v1210_v4, %v240_v29  ;;  %v249_v10 = vld [vmem:[%s1218_s26 + $0x68] sm:$0xff] }
  0x2d   : > { %v488_v23 = vsel %vm405_vm0, 0.0, %v450_v17  ;;  %v349_v24 = vmax.f32 %v317_v19, 0.0  ;;  %v290_v37 = vmul.f32 %v1210_v4, %v254_v31  ;;  %v291_v38 = vmul.f32 %v1210_v4, %v255_v32  ;;  %v262_v31 = vld [vmem:[%s1218_s26 + $0xd0] sm:$0xff] }
  0x2e   : > { %v547_v21 = vsel %vm490_vm1, %v545_v14, %v546_v15  ;;  %v369_v30 = vmax.f32 %v337_v25, 0.0  ;;  %v312_v43 = vadd.f32 %v1223_v6, %v276_v33  ;;  %v533_v44 = vrot.slane %v1347_v9, 1 }
  0x2f   : > { %v421_v27 = vrot.slane %v349_v24, 7  ;;  %v576_v45 = vsel %vm490_vm1, %v575_v34, %v545_v14  ;;  %v326_v47 = vadd.f32 %v1223_v6, %v290_v37  ;;  %v327_v49 = vadd.f32 %v1223_v6, %v291_v38 }
  0x30   : > { %605 = vrot.lane.b32.xlu0 %v1316_v39, %s1156_s22  ;;  %673 = vrot.lane.b32.xlu1 %v553_v46, %s1159_s6  ;;  %v451_v36 = vrot.slane %v369_v30, 7  ;;  %v277_v50 = vmul.f32 %v1210_v4, %v241_v40  ;;  %v344_v53 = vmax.f32 %v312_v43, 0.0  ;;  %v583_v2 = vrot.slane %v488_v23, 1 }
  0x31   : > { %v422_v35 = vsel %vm405_vm0, %v420_v1, %v421_v27  ;;  %v507_v42 = vrot.slane %v421_v27, 1  ;;  %v358_v58 = vmax.f32 %v326_v47, 0.0  ;;  %v359_v59 = vmax.f32 %v327_v49, 0.0  ;;  %v258_v49 = vld [vmem:[%s1218_s26 + $0xb0] sm:$0xff] }
  0x32   : > { %v506_v41 = vrot.slane %v422_v35, 1  ;;  %v452_v46 = vsel %vm405_vm0, %v450_v17, %v451_v36  ;;  %v558_v56 = vrot.slane %v451_v36, 1  ;;  %v414_v1 = vrot.slane %v344_v53, 7  ;;  %v263_v36 = vld [vmem:[%s1218_s26 + $0xd8] sm:$0xff] }
  0x33   : > { %713 = vrot.lane.b32.xlu2 %v1329_v52, %s1161_s8  ;;  %v557_v55 = vrot.slane %v452_v46, 1  ;;  %v435_v7 = vrot.slane %v358_v58, 7  ;;  %v285_v17 = vmul.f32 %v1210_v4, %v249_v10  ;;  %v284_v19 = vmul.f32 %v1210_v4, %v248_v13 }
  0x34   : > { %v508_v51 = vsel %vm490_vm1, %v506_v41, %v507_v42  ;;  %v1397_v11 = vsel %vm405_vm0, 0.0, %v414_v1  ;;  %v298_v34 = vmul.f32 %v1210_v4, %v262_v31  ;;  %v299_v40 = vmul.f32 %v1210_v4, %v263_v36  ;;  %v865_v31 = vld [vmem:[%s1713_s3 + $0x40] sm:$0xff] }
  0x35   : > { %v559_v5 = vsel %vm490_vm1, %v557_v55, %v558_v56  ;;  %v584_v12 = vsel %vm490_vm1, %v583_v2, %v557_v55  ;;  %v483_v24 = vsel %vm405_vm0, 0.0, %v435_v7  ;;  %v320_v25 = vadd.f32 %v1223_v6, %v284_v19  ;;  %898 = vmatpush.msra.mxu0 %v865_v31  ;;  %1102 = vmatpush.msra.mxu2 %v865_v31 }
  0x36   : > { %v334_v38 = vadd.f32 %v1223_v6, %v298_v34  ;;  %v529_v42 = vrot.slane %v1397_v11, 1  ;;  %v335_v47 = vadd.f32 %v1223_v6, %v299_v40  ;;  %v294_v55 = vmul.f32 %v1210_v4, %v258_v49  ;;  %1101 = vmatpush.msra.mxu1 %v865_v31  ;;  %1103 = vmatpush.msra.mxu3 %v865_v31 }
  0x37   : > { %v352_v32 = vmax.f32 %v320_v25, 0.0  ;;  %v573_v56 = vrot.slane %v483_v24, 1  ;;  %vm866_vm10 = vcmask 588800   ;;  %vm983_vm11 = vcmask 58368  }
  0x38   : > { %737 = vrot.lane.b32.xlu0 %v496_v54, %s1162_s9  ;;  %645 = vrot.lane.b32.xlu1 %v484_v63, %s1158_s30  ;;  %v313_v63 = vadd.f32 %v1223_v6, %v277_v50  ;;  %v366_v46 = vmax.f32 %v334_v38, 0.0 }
  0x39   : > { %v426_v37 = vrot.slane %v352_v32, 7  ;;  %v267_v32 = vld [vmem:[%s1218_s26 + $0xf8] sm:$0xff] }
  0x3a   : > { %v345_v0 = vmax.f32 %v313_v63, 0.0  ;;  %v447_v53 = vrot.slane %v366_v46, 7 }
  0x3b   : > { %697 = vrot.lane.b32.xlu2 %v580_v8, %s1160_s7  ;;  %v436_v8 = vrot.slane %v359_v59, 7  ;;  %v1427_v43 = vsel %vm405_vm0, 0.0, %v426_v37 }
  0x3c   : > { %v415_v15 = vrot.slane %v345_v0, 7  ;;  %v487_v59 = vsel %vm405_vm0, 0.0, %v447_v53  ;;  %v537_v19 = vrot.slane %v1427_v43, 1 }
  0x3d   : > { %v437_v14 = vsel %vm405_vm0, %v435_v7, %v436_v8 }
  0x3e   : > { %v542_v20 = vrot.slane %v437_v14, 1  ;;  %v416_v22 = vsel %vm405_vm0, %v414_v1, %v415_v15  ;;  %v501_v29 = vrot.slane %v415_v15, 1  ;;  %v330_v1 = vadd.f32 %v1223_v6, %v294_v55 }
  0x3f   : > { %v500_v27 = vrot.slane %v416_v22, 1 }
  0x40   : > { %721 = vrot.lane.b32.xlu0 %v1347_v9, %s1161_s8  ;;  %629 = vrot.lane.b32.xlu1 %v1356_v16, %s1157_s29  ;;  %v574_v2 = vsel %vm490_vm1, %v573_v56, %v542_v20  ;;  %v362_v7 = vmax.f32 %v330_v1, 0.0  ;;  %v251_v1 = vld [vmem:[%s1218_s26 + $0x78] sm:$0xff] }
  0x41   : > { %v502_v33 = vsel %vm490_vm1, %v500_v27, %v501_v29  ;;  %v530_v50 = vsel %vm490_vm1, %v529_v42, %v500_v27  ;;  %v862_v42 = vld [vmem:[%s1713_s3 + $0x28] sm:$0xff] }
  0x42   : > { %v441_v13 = vrot.slane %v362_v7, 7 }
  0x43   : > { %669 = vrot.lane.b32.xlu2 %v547_v21, %s1159_s6  ;;  %v543_v21 = vrot.slane %v436_v8, 1  ;;  %v259_v8 = vld [vmem:[%s1218_s26 + $0xb8] sm:$0xff] }
  0x44   : > { %v295_v15 = vmul.f32 %v1210_v4, %v259_v8 }
  0x48   : > { %653 = vrot.lane.b32.xlu0 %v488_v23, %s1158_s30  ;;  %761 = vrot.lane.b32.xlu1 %v526_v26, %s1163_s10  ;;  %v321_v23 = vadd.f32 %v1223_v6, %v285_v17 }
  0x4a   : > { %v353_v30 = vmax.f32 %v321_v23, 0.0 }
  0x4b   : > { %595 = vrot.lane.b32.xlu2 %v496_v54, %s1156_s22  ;;  %v534_v54 = vsel %vm490_vm1, %v533_v44, %v506_v41 }
  0x4c   : > { %v427_v35 = vrot.slane %v353_v30, 7  ;;  %v266_v30 = vld [vmem:[%s1218_s26 + $0xf0] sm:$0xff] }
  0x4d   : > { %v302_v36 = vmul.f32 %v1210_v4, %v266_v30 }
  0x4e   : > { %v428_v41 = vsel %vm405_vm0, %v426_v37, %v427_v35  ;;  %v863_v37 = vld [vmem:[%s1713_s3 + $0x30] sm:$0xff] }
  0x4f   : > { %v512_v44 = vrot.slane %v428_v41, 1  ;;  %v303_v41 = vmul.f32 %v1210_v4, %v267_v32  ;;  %v338_v46 = vadd.f32 %v1223_v6, %v302_v36 }
  0x50   : > { %619 = vrot.lane.b32.xlu0 %v526_v26, %s1157_s29  ;;  %693 = vrot.lane.b32.xlu1 %v576_v45, %s1160_s7  ;;  %v544_v26 = vsel %vm490_vm1, %v542_v20, %v543_v21  ;;  %v513_v45 = vrot.slane %v427_v35, 1  ;;  %v1458_v20 = vsel %vm405_vm0, 0.0, %v441_v13  ;;  %v331_v21 = vadd.f32 %v1223_v6, %v295_v15 }
  0x51   : > { %v538_v23 = vsel %vm490_vm1, %v537_v19, %v512_v44  ;;  %v339_v49 = vadd.f32 %v1223_v6, %v303_v41  ;;  %v370_v55 = vmax.f32 %v338_v46, 0.0 }
  0x52   : > { %v363_v25 = vmax.f32 %v331_v21, 0.0 }
  0x53   : > { %745 = vrot.lane.b32.xlu2 %v508_v51, %s1162_s9 }
  0x54   : > { %v442_v29 = vrot.slane %v363_v25, 7 }
  0x56   : > { %v1492_v40 = vsel %vm405_vm0, %v441_v13, %v442_v29  ;;  %v577_v13 = vrot.slane %v1458_v20, 1 }
  0x58   : > { %769 = vrot.lane.b32.xlu0 %v534_v54, %s1163_s10  ;;  %677 = vrot.lane.b32.xlu1 %v559_v5, %s1159_s6 }
  0x5b   : > { %717 = vrot.lane.b32.xlu2 %v1397_v11, %s1161_s8 }
  0x60   : > { %701 = vrot.lane.b32.xlu0 %v584_v12, %s1160_s7  ;;  %603 = vrot.lane.b32.xlu1 %v508_v51, %s1156_s22  ;;  %v514_v51 = vsel %vm490_vm1, %v512_v44, %v513_v45  ;;  %v548_v44 = vrot.slane %v1492_v40, 1  ;;  %v549_v45 = vrot.slane %v442_v29, 1 }
  0x63   : > { %643 = vrot.lane.b32.xlu2 %v483_v24, %s1158_s30 }
  0x68   : > { %667 = vrot.lane.b32.xlu0 %v544_v26, %s1159_s6  ;;  %741 = vrot.lane.b32.xlu1 %v502_v33, %s1162_s9  ;;  %v581_v26 = vrot.slane %v487_v59, 1 }
  0x6b   : > { %627 = vrot.lane.b32.xlu2 %v534_v54, %s1157_s29  ;;  %v367_v54 = vmax.f32 %v335_v47, 0.0 }
  0x6d   : > { %v448_v63 = vrot.slane %v367_v54, 7  ;;  %v550_v54 = vsel %vm490_vm1, %v548_v44, %v549_v45 }
  0x6f   : > { %v449_v5 = vsel %vm405_vm0, %v447_v53, %v448_v63  ;;  %v555_v10 = vrot.slane %v448_v63, 1  ;;  %v250_v63 = vld [vmem:[%s1218_s26 + $0x70] sm:$0xff] }
  0x70   : > { %599 = vrot.lane.b32.xlu0 %v502_v33, %s1156_s22  ;;  %725 = vrot.lane.b32.xlu1 %v1427_v43, %s1161_s8  ;;  %v554_v0 = vrot.slane %v449_v5, 1  ;;  %v864_v33 = vld [vmem:[%s1713_s3 + $0x38] sm:$0xff]  ;;  %v286_v5 = vmul.f32 %v1210_v4, %v250_v63 }
  0x71   : > { %899 = vmatpush.msra.mxu0 %v864_v33  ;;  %1105 = vmatpush.msra.mxu2 %v864_v33 }
  0x72   : > { %v556_v17 = vsel %vm490_vm1, %v554_v0, %v555_v10  ;;  %v582_v35 = vsel %vm490_vm1, %v581_v26, %v554_v0  ;;  %1104 = vmatpush.msra.mxu1 %v864_v33  ;;  %1106 = vmatpush.msra.mxu3 %v864_v33  ;;  %v287_v0 = vmul.f32 %v1210_v4, %v251_v1  ;;  %v857_v10 = vld [vmem:[%s1713_s3] sm:$0xff] }
  0x73   : > { %765 = vrot.lane.b32.xlu2 %v530_v50, %s1163_s10  ;;  %900 = vmatpush.msra.mxu0 %v863_v37 }
  0x74   : > { %1108 = vmatpush.msra.mxu2 %v863_v37  ;;  %1107 = vmatpush.msra.mxu1 %v863_v37 }
  0x75   : > { %v1438_v58 = vpop.permute.xlu2 %625  ;;  %901 = vmatpush.msra.mxu0 %v862_v42  ;;  %1109 = vmatpush.msra.mxu3 %v863_v37 }
  0x76   : > { %1111 = vmatpush.msra.mxu2 %v862_v42  ;;  %1110 = vmatpush.msra.mxu1 %v862_v42 }
  0x77   : > { %1112 = vmatpush.msra.mxu3 %v862_v42 }
  0x78   : > { %749 = vrot.lane.b32.xlu0 %v514_v51, %s1162_s9  ;;  %651 = vrot.lane.b32.xlu1 %v487_v59, %s1158_s30  ;;  %v371_v59 = vmax.f32 %v339_v49, 0.0 }
  0x7a   : > { %v454_v8 = vrot.slane %v371_v59, 7 }
  0x7b   : > { %691 = vrot.lane.b32.xlu2 %v574_v2, %s1160_s7  ;;  %v453_v2 = vrot.slane %v370_v55, 7 }
  0x7c   : > { %v561_v25 = vrot.slane %v454_v8, 1 }
  0x7d   : > { %v1449_v12 = vpop.permute.xlu2 %665  ;;  %v489_v4 = vsel %vm405_vm0, 0.0, %v453_v2  ;;  %v455_v21 = vsel %vm405_vm0, %v453_v2, %v454_v8 }
  0x7e   : > { %v585_v36 = vrot.slane %v489_v4, 1 }
  0x80   : > { %715 = vrot.lane.b32.xlu0 %v1273_v61, %s1161_s8  ;;  %623 = vrot.lane.b32.xlu1 %v530_v50, %s1157_s29  ;;  %v861_v50 = vld [vmem:[%s1713_s3 + $0x20] sm:$0xff] }
  0x81   : > { %902 = vmatpush.msra.mxu0 %v861_v50  ;;  %1114 = vmatpush.msra.mxu2 %v861_v50 }
  0x82   : > { %v1451_v14 = vpop.permute.xlu0 %593  ;;  %1113 = vmatpush.msra.mxu1 %v861_v50  ;;  %1115 = vmatpush.msra.mxu3 %v861_v50 }
  0x83   : > { %675 = vrot.lane.b32.xlu2 %v556_v17, %s1159_s6  ;;  %v322_v17 = vadd.f32 %v1223_v6, %v286_v5  ;;  %v786_v46 = vsel %vm785_vm2, %v1203_v3, %v1451_v14 }
  0x85   : > { %v1464_v22 = vpop.permute.xlu2 %689  ;;  %v354_v26 = vmax.f32 %v322_v17, 0.0 }
  0x87   : > { %v429_v32 = vrot.slane %v354_v26, 7 }
  0x88   : > { %647 = vrot.lane.b32.xlu0 %v1458_v20, %s1158_s30  ;;  %773 = vrot.lane.b32.xlu1 %v538_v23, %s1163_s10  ;;  %v560_v20 = vrot.slane %v455_v21, 1 }
  0x89   : > { %v481_v37 = vsel %vm405_vm0, 0.0, %v429_v32 }
  0x8a   : > { %v1467_v24 = vpop.permute.xlu0 %617  ;;  %v1470_v27 = vpop.permute.xlu1 %641  ;;  %v562_v31 = vsel %vm490_vm1, %v560_v20, %v561_v25  ;;  %v591_v42 = vrot.slane %v481_v37, 1 }
  0x8b   : > { %607 = vrot.lane.b32.xlu2 %v514_v51, %s1156_s22  ;;  %v860_v51 = vld [vmem:[%s1713_s3 + $0x18] sm:$0xff]  ;;  %v795_v50 = vsel %vm794_vm3, %v786_v46, %v1467_v24 }
  0x8c   : > { %903 = vmatpush.msra.mxu0 %v860_v51  ;;  %1117 = vmatpush.msra.mxu2 %v860_v51 }
  0x8d   : > { %v1482_v34 = vpop.permute.xlu2 %713  ;;  %1116 = vmatpush.msra.mxu1 %v860_v51  ;;  %1118 = vmatpush.msra.mxu3 %v860_v51  ;;  %v804_v51 = vsel %vm803_vm4, %v795_v50, %v1470_v27 }
  0x8e   : > { %v813_v59 = vsel %vm812_vm5, %v804_v51, %v1449_v12 }
  0x8f   : > { %v822_v27 = vsel %vm821_vm6, %v813_v59, %v1464_v22 }
  0x90   : > { %631 = vrot.lane.b32.xlu0 %v538_v23, %s1157_s29  ;;  %699 = vrot.lane.b32.xlu1 %v582_v35, %s1160_s7  ;;  %v323_v23 = vadd.f32 %v1223_v6, %v287_v0  ;;  %v831_v12 = vsel %vm830_vm7, %v822_v27, %v1482_v34 }
  0x92   : > { %v1489_v38 = vpop.permute.xlu0 %597  ;;  %v1501_v47 = vpop.permute.xlu1 %649  ;;  %v355_v30 = vmax.f32 %v323_v23, 0.0 }
  0x93   : > { %739 = vrot.lane.b32.xlu2 %v1270_v60, %s1162_s9  ;;  %v859_v60 = vld [vmem:[%s1713_s3 + $0x10] sm:$0xff]  ;;  %v788_v23 = vsel %vm785_vm2, %v1273_v61, %v1489_v38 }
  0x94   : > { %904 = vmatpush.msra.mxu0 %v859_v60  ;;  %1120 = vmatpush.msra.mxu2 %v859_v60  ;;  %v430_v35 = vrot.slane %v355_v30, 7 }
  0x95   : > { %v1514_v53 = vpop.permute.xlu2 %697  ;;  %1119 = vmatpush.msra.mxu1 %v859_v60  ;;  %1121 = vmatpush.msra.mxu3 %v859_v60 }
  0x96   : > { %v431_v41 = vsel %vm405_vm0, %v429_v32, %v430_v35  ;;  %v588_v14 = vrot.slane %v430_v35, 1 }
  0x97   : > { %v587_v45 = vrot.slane %v431_v41, 1 }
  0x98   : > { %763 = vrot.lane.b32.xlu0 %v1293_v18, %s1163_s10  ;;  %671 = vrot.lane.b32.xlu1 %v550_v54, %s1159_s6  ;;  %v858_v18 = vld [vmem:[%s1713_s3 + $0x8] sm:$0xff] }
  0x99   : > { %905 = vmatpush.msra.mxu0 %v858_v18  ;;  %1123 = vmatpush.msra.mxu2 %v858_v18  ;;  %v592_v54 = vsel %vm490_vm1, %v591_v42, %v587_v45 }
  0x9a   : > { %v1520_v56 = vpop.permute.xlu0 %621  ;;  %v1529_v7 = vpop.permute.xlu1 %601  ;;  %1122 = vmatpush.msra.mxu1 %v858_v18  ;;  %1124 = vmatpush.msra.mxu3 %v858_v18 }
  0x9b   : > { %723 = vrot.lane.b32.xlu2 %v1338_v62, %s1161_s8  ;;  %906 = vmatpush.msra.mxu0 %v857_v10 }
  0x9c   : > { %1126 = vmatpush.msra.mxu2 %v857_v10  ;;  %1125 = vmatpush.msra.mxu1 %v857_v10 }
  0x9d   : > { %v1540_v15 = vpop.permute.xlu2 %669  ;;  %1127 = vmatpush.msra.mxu3 %v857_v10 }
  0xa0   : > { %747 = vrot.lane.b32.xlu0 %v1316_v39, %s1162_s9  ;;  %655 = vrot.lane.b32.xlu1 %v489_v4, %s1158_s30  ;;  %v578_v39 = vsel %vm490_vm1, %v577_v13, %v548_v44  ;;  %v586_v44 = vsel %vm490_vm1, %v585_v36, %v560_v20  ;;  %s1100_s30 = sshll.u32 %s1717_s19, 6 }
  0xa2   : > { %v606_v19 = vpop.permute.xlu0 %605  ;;  %v674_v29 = vpop.permute.xlu1 %673 }
  0xa3   : > { %695 = vrot.lane.b32.xlu2 %v578_v39, %s1160_s7  ;;  %v792_v55 = vsel %vm785_vm2, %v1338_v62, %v606_v19  ;;  %v790_v62 = vsel %vm785_vm2, %v1255_v48, %v1529_v7 }
  0xa4   : > { %v799_v18 = vsel %vm794_vm3, %v790_v62, %v1438_v58 }
  0xa5   : > { %v596_v6 = vpop.permute.xlu2 %595 }
  0xa6   : > { %v787_v34 = vsel %vm785_vm2, %v1329_v52, %v596_v6 }
  0xa8   : > { %771 = vrot.lane.b32.xlu0 %v1356_v16, %s1163_s10  ;;  %679 = vrot.lane.b32.xlu1 %v562_v31, %s1159_s6 }
  0xaa   : > { %v738_v33 = vpop.permute.xlu0 %737  ;;  %v1554_v40 = vpop.permute.xlu1 %645 }
  0xab   : > { %719 = vrot.lane.b32.xlu2 %v1255_v48, %s1161_s8  ;;  %v840_v1 = vsel %vm839_vm8, %v831_v12, %v738_v33 }
  0xad   : > { %v746_v16 = vpop.permute.xlu2 %745 }
  0xb0   : > { %727 = vrot.lane.b32.xlu0 %v481_v37, %s1161_s8  ;;  %703 = vrot.lane.b32.xlu1 %v586_v44, %s1160_s7  ;;  %s1668_s8 = scalar_lea.vmem %s1714_s4, %s1100_s30 }
  0xb2   : > { %v722_v49 = vpop.permute.xlu0 %721  ;;  %v630_v60 = vpop.permute.xlu1 %629 }
  0xb3   : > { %v801_v3 = vsel %vm794_vm3, %v792_v55, %v630_v60  ;;  %743 = vrot.lane.b32.xlu2 %v1304_v28, %s1162_s9  ;;  %v589_v28 = vsel %vm490_vm1, %v587_v45, %v588_v14 }
  0xb5   : > { %v718_v24 = vpop.permute.xlu2 %717 }
  0xb8   : > { %775 = vrot.lane.b32.xlu0 %v592_v54, %s1163_s10  ;;  %767 = vrot.lane.b32.xlu1 %v1263_v57, %s1163_s10  ;;  %v808_v57 = vsel %vm803_vm4, %v799_v18, %v1501_v47 }
  0xb9   : > { %v817_v7 = vsel %vm812_vm5, %v808_v57, %v674_v29 }
  0xba   : > { %v654_v63 = vpop.permute.xlu0 %653  ;;  %v762_v22 = vpop.permute.xlu1 %761  ;;  %v826_v58 = vsel %vm821_vm6, %v817_v7, %v1514_v53  ;;  %v797_v53 = vsel %vm794_vm3, %v788_v23, %v1520_v56 }
  0xbb   : > { %v849_v2 = vsel %vm848_vm9, %v840_v1, %v762_v22  ;;  %751 = vrot.lane.b32.xlu2 %v589_v28, %s1162_s9  ;;  %v835_v10 = vsel %vm830_vm7, %v826_v58, %v722_v49  ;;  %v806_v20 = vsel %vm803_vm4, %v797_v53, %v1554_v40  ;;  %s1088_s9 = sshll.u32 %s1717_s19, 1 }
  0xbc   : > { %1089 = vmatmul.msk.f32.vlgmr.msra.gmra.mxu0 %vm866_vm10, %v849_v2  ;;  %v844_v17 = vsel %vm839_vm8, %v835_v10, %v746_v16  ;;  %v815_v26 = vsel %vm812_vm5, %v806_v20, %v1540_v15  ;;  %v810_v16 = vsel %vm803_vm4, %v801_v3, %v654_v63  ;;  %s235_s13 = scalar_lea.vmem %s1715_s5, %s1088_s9 }
  0xbd   : > { %v644_v48 = vpop.permute.xlu2 %643 }
  0xc2   : > { %v620_v5 = vpop.permute.xlu0 %619  ;;  %v694_v0 = vpop.permute.xlu1 %693 }
  0xc3   : > { %v796_v8 = vsel %vm794_vm3, %v787_v34, %v620_v5  ;;  %v824_v30 = vsel %vm821_vm6, %v815_v26, %v694_v0 }
  0xc4   : > { %v833_v31 = vsel %vm830_vm7, %v824_v30, %v718_v24  ;;  %v805_v55 = vsel %vm803_vm4, %v796_v8, %v644_v48 }
  0xc5   : > { %v628_v13 = vpop.permute.xlu2 %627 }
  0xca   : > { %v770_v4 = vpop.permute.xlu0 %769  ;;  %v678_v52 = vpop.permute.xlu1 %677 }
  0xcb   : > { %v853_v47 = vsel %vm848_vm9, %v844_v17, %v770_v4  ;;  %v819_v44 = vsel %vm812_vm5, %v810_v16, %v678_v52 }
  0xcc   : > { %1093 = vmatmul.msk.f32.vlgmr.msra.gmra.mxu2 %vm866_vm10, %v853_v47 }
  0xcd   : > { %v766_v19 = vpop.permute.xlu2 %765 }
  0xd2   : > { %v702_v21 = vpop.permute.xlu0 %701  ;;  %v604_v39 = vpop.permute.xlu1 %603 }
  0xd3   : > { %v828_v45 = vsel %vm821_vm6, %v819_v44, %v702_v21  ;;  %v791_v12 = vsel %vm785_vm2, %v1347_v9, %v604_v39 }
  0xd4   : > { %v800_v22 = vsel %vm794_vm3, %v791_v12, %v628_v13 }
  0xd5   : > { %v692_v25 = vpop.permute.xlu2 %691 }
  0xda   : > { %v668_v29 = vpop.permute.xlu0 %667  ;;  %v742_v6 = vpop.permute.xlu1 %741 }
  0xdb   : > { %v842_v32 = vsel %vm839_vm8, %v833_v31, %v742_v6  ;;  %v814_v59 = vsel %vm812_vm5, %v805_v55, %v668_v29 }
  0xdc   : > { %v851_v61 = vsel %vm848_vm9, %v842_v32, %v766_v19  ;;  %v823_v3 = vsel %vm821_vm6, %v814_v59, %v692_v25 }
  0xdd   : > { %1091 = vmatmul.msk.f32.vlgmr.msra.gmra.mxu1 %vm866_vm10, %v851_v61  ;;  %v676_v56 = vpop.permute.xlu2 %675 }
  0xe2   : > { %v600_v38 = vpop.permute.xlu0 %599  ;;  %v726_v33 = vpop.permute.xlu1 %725 }
  0xe3   : > { %v837_v46 = vsel %vm830_vm7, %v828_v45, %v726_v33  ;;  %v789_v13 = vsel %vm785_vm2, %v1397_v11, %v600_v38 }
  0xe5   : > { %v608_v36 = vpop.permute.xlu2 %607 }
  0xe6   : > { %v793_v17 = vsel %vm785_vm2, %v1427_v43, %v608_v36 }
  0xea   : > { %v750_v35 = vpop.permute.xlu0 %749  ;;  %v652_v37 = vpop.permute.xlu1 %651 }
  0xeb   : > { %v846_v49 = vsel %vm839_vm8, %v837_v46, %v750_v35  ;;  %v809_v18 = vsel %vm803_vm4, %v800_v22, %v652_v37 }
  0xec   : > { %v818_v48 = vsel %vm812_vm5, %v809_v18, %v676_v56 }
  0xed   : > { %v740_v41 = vpop.permute.xlu2 %739 }
  0xf2   : > { %v716_v40 = vpop.permute.xlu0 %715  ;;  %v624_v15 = vpop.permute.xlu1 %623 }
  0xf3   : > { %v832_v24 = vsel %vm830_vm7, %v823_v3, %v716_v40  ;;  %v798_v47 = vsel %vm794_vm3, %v789_v13, %v624_v15 }
  0xf4   : > { %v841_v63 = vsel %vm839_vm8, %v832_v24, %v740_v41 }
  0xf5   : > { %v724_v54 = vpop.permute.xlu2 %723 }
  0xfa   : > { %v648_v42 = vpop.permute.xlu0 %647  ;;  %v774_v50 = vpop.permute.xlu1 %773 }
  0xfb   : > { %v855_v51 = vsel %vm848_vm9, %v846_v49, %v774_v50  ;;  %v807_v52 = vsel %vm803_vm4, %v798_v47, %v648_v42 }
  0xfc   : > { %1095 = vmatmul.msk.f32.vlgmr.msra.gmra.mxu3 %vm866_vm10, %v855_v51 }
  0xfd   : > { %v696_v62 = vpop.permute.xlu2 %695 }
 0x102   : > { %v632_v60 = vpop.permute.xlu0 %631  ;;  %v700_v14 = vpop.permute.xlu1 %699 }
 0x103   : > { %v827_v34 = vsel %vm821_vm6, %v818_v48, %v700_v14  ;;  %v802_v19 = vsel %vm794_vm3, %v793_v17, %v632_v60 }
 0x104   : > { %v836_v7 = vsel %vm830_vm7, %v827_v34, %v724_v54 }
 0x105   : > { %v720_v57 = vpop.permute.xlu2 %719 }
 0x10a   : > { %v764_v27 = vpop.permute.xlu0 %763  ;;  %v672_v1 = vpop.permute.xlu1 %671 }
 0x10b   : > { %v850_v28 = vsel %vm848_vm9, %v841_v63, %v764_v27  ;;  %v816_v21 = vsel %vm812_vm5, %v807_v52, %v672_v1 }
 0x10c   : > { %1090 = vmatmul.msk.f32.gmra.mxu0 %vm866_vm10, %v850_v28  ;;  %v825_v25 = vsel %vm821_vm6, %v816_v21, %v696_v62 }
 0x10d   : > { %v744_v10 = vpop.permute.xlu2 %743  ;;  %v834_v30 = vsel %vm830_vm7, %v825_v25, %v720_v57 }
 0x10e   : > { %v843_v31 = vsel %vm839_vm8, %v834_v30, %v744_v10 }
 0x112   : > { %v748_v2 = vpop.permute.xlu0 %747  ;;  %v656_v5 = vpop.permute.xlu1 %655 }
 0x113   : > { %v845_v8 = vsel %vm839_vm8, %v836_v7, %v748_v2  ;;  %v811_v23 = vsel %vm803_vm4, %v802_v19, %v656_v5 }
 0x115   : > { %v752_v20 = vpop.permute.xlu2 %751 }
 0x11a   : > { %v772_v58 = vpop.permute.xlu0 %771  ;;  %v680_v9 = vpop.permute.xlu1 %679 }
 0x11b   : > { %v854_v0 = vsel %vm848_vm9, %v845_v8, %v772_v58  ;;  %v820_v53 = vsel %vm812_vm5, %v811_v23, %v680_v9 }
 0x11c   : > { %1094 = vmatmul.msk.f32.gmra.mxu2 %vm866_vm10, %v854_v0 }
 0x122   : > { %v728_v4 = vpop.permute.xlu0 %727  ;;  %v704_v39 = vpop.permute.xlu1 %703 }
 0x123   : > { %v829_v11 = vsel %vm821_vm6, %v820_v53, %v704_v39 }
 0x124   : > { %v838_v43 = vsel %vm830_vm7, %v829_v11, %v728_v4 }
 0x125   : > { %v847_v26 = vsel %vm839_vm8, %v838_v43, %v752_v20 }
 0x12a   : > { %v776_v29 = vpop.permute.xlu0 %775  ;;  %v768_v32 = vpop.permute.xlu1 %767 }
 0x12b   : > { %v856_v6 = vsel %vm848_vm9, %v847_v26, %v776_v29  ;;  %v852_v61 = vsel %vm848_vm9, %v843_v31, %v768_v32 }
 0x12c   : > { %1096 = vmatmul.msk.f32.gmra.mxu3 %vm866_vm10, %v856_v6  ;;  %1092 = vmatmul.msk.f32.gmra.mxu1 %vm866_vm10, %v852_v61 }
 0x139   : > { %v908_v38 = vpop.f32.mrf.mxu0 }
 0x13a   : > { %985 = vst.msk [vmem:[%s1668_s8] sm:$0xff] %vm785_vm2, %v908_v38  ;;  %v953_v15 = vmul.f32 %v908_v38, %v908_v38  ;;  %v932_v16 = vsel %vm785_vm2, %v908_v38, 0.0 }
 0x13c   : > { %v961_v45 = vsel %vm785_vm2, %v953_v15, 0.0 }
 0x14f   : > { %v920_v56 = vpop.f32.mrf.mxu2 }
 0x150   : > { %989 = vst.msk [vmem:[%s1668_s8 + $0x20] sm:$0xff] %vm785_vm2, %v920_v56  ;;  %v957_v55 = vmul.f32 %v920_v56, %v920_v56  ;;  %v939_v63 = vsel %vm785_vm2, %v920_v56, 0.0 }
 0x152   : > { %v968_v22 = vsel %vm785_vm2, %v957_v55, 0.0 }
 0x15a   : > { %v914_v33 = vpop.f32.mrf.mxu1 }
 0x15b   : > { %987 = vst.msk [vmem:[%s1668_s8 + $0x10] sm:$0xff] %vm785_vm2, %v914_v33  ;;  %v955_v46 = vmul.f32 %v914_v33, %v914_v33  ;;  %v935_v50 = vsel %vm785_vm2, %v914_v33, 0.0 }
 0x15d   : > { %v964_v60 = vsel %vm785_vm2, %v955_v46, 0.0 }
 0x17f   : > { %v926_v35 = vpop.f32.mrf.mxu3 }
 0x180   : > { %991 = vst.msk [vmem:[%s1668_s8 + $0x30] sm:$0xff] %vm785_vm2, %v926_v35  ;;  %v959_v18 = vmul.f32 %v926_v35, %v926_v35  ;;  %v943_v34 = vsel %vm785_vm2, %v926_v35, 0.0 }
 0x182   : > { %v972_v0 = vsel %vm785_vm2, %v959_v18, 0.0 }
 0x189   : > { %v911_v36 = vpop.f32.mrf.mxu0 }
 0x18a   : > { %986 = vst.msk [vmem:[%s1668_s8 + $0x8] sm:$0xff] %vm785_vm2, %v911_v36  ;;  %v954_v40 = vmul.f32 %v911_v36, %v911_v36  ;;  %v933_v41 = vsel %vm785_vm2, %v911_v36, 0.0 }
 0x18b   : > { %v934_v44 = vadd.f32 %v933_v41, %v932_v16 }
 0x18c   : > { %v962_v42 = vsel %vm785_vm2, %v954_v40, 0.0 }
 0x18d   : > { %v963_v49 = vadd.f32 %v962_v42, %v961_v45  ;;  %v936_v54 = vadd.f32 %v935_v50, %v934_v44 }
 0x18f   : > { %v965_v24 = vadd.f32 %v964_v60, %v963_v49 }
 0x19f   : > { %v923_v37 = vpop.f32.mrf.mxu2 }
 0x1a0   : > { %990 = vst.msk [vmem:[%s1668_s8 + $0x28] sm:$0xff] %vm785_vm2, %v923_v37  ;;  %v958_v62 = vmul.f32 %v923_v37, %v923_v37  ;;  %v941_v2 = vsel %vm785_vm2, %v923_v37, 0.0 }
 0x1a2   : > { %v970_v5 = vsel %vm785_vm2, %v958_v62, 0.0 }
 0x1a9   : > { %v917_v51 = vpop.f32.mrf.mxu1 }
 0x1aa   : > { %v937_v59 = vsel %vm785_vm2, %v917_v51, 0.0  ;;  %v956_v3 = vmul.f32 %v917_v51, %v917_v51  ;;  %988 = vst.msk [vmem:[%s1668_s8 + $0x18] sm:$0xff] %vm785_vm2, %v917_v51 }
 0x1ab   : > { %v938_v14 = vadd.f32 %v937_v59, %v936_v54 }
 0x1ac   : > { %v966_v28 = vsel %vm785_vm2, %v956_v3, 0.0 }
 0x1ad   : > { %v940_v12 = vadd.f32 %v939_v63, %v938_v14  ;;  %v967_v1 = vadd.f32 %v966_v28, %v965_v24 }
 0x1af   : > { %v929_v27 = vpop.f32.mrf.mxu3  ;;  %v969_v48 = vadd.f32 %v968_v22, %v967_v1  ;;  %v942_v57 = vadd.f32 %v941_v2, %v940_v12 }
 0x1b0   : > { %992 = vst.msk [vmem:[%s1668_s8 + $0x38] sm:$0xff] %vm785_vm2, %v929_v27  ;;  %v960_v7 = vmul.f32 %v929_v27, %v929_v27  ;;  %v945_v9 = vsel %vm785_vm2, %v929_v27, 0.0 }
 0x1b1   : > { %v944_v8 = vadd.f32 %v943_v34, %v942_v57  ;;  %v971_v58 = vadd.f32 %v970_v5, %v969_v48 }
 0x1b2   : > { %v974_v4 = vsel %vm785_vm2, %v960_v7, 0.0 }
 0x1b3   : > { %v946_v10 = vadd.f32 %v945_v9, %v944_v8  ;;  %v973_v13 = vadd.f32 %v972_v0, %v971_v58 }
 0x1b5   : > { %v947_v17 = vrot.slane %v946_v10, 4  ;;  %v975_v47 = vadd.f32 %v974_v4, %v973_v13 }
 0x1b7   : > { %v948_v52 = vadd.f32 %v947_v17, %v946_v10  ;;  %v976_v19 = vrot.slane %v975_v47, 4 }
 0x1b9   : > { %v949_v21 = vrot.slane %v948_v52, 2  ;;  %v977_v23 = vadd.f32 %v976_v19, %v975_v47 }
 0x1bb   : > { %v950_v53 = vadd.f32 %v949_v21, %v948_v52  ;;  %v978_v39 = vrot.slane %v977_v23, 2 }
 0x1bd   : > { %v951_v11 = vrot.slane %v950_v53, 1  ;;  %v979_v20 = vadd.f32 %v978_v39, %v977_v23 }
 0x1bf   : > { %v980_v25 = vrot.slane %v979_v20, 1  ;;  %v952_v43 = vadd.f32 %v951_v11, %v950_v53 }
 0x1c1   : > { %v981_v26 = vadd.f32 %v980_v25, %v979_v20 }
 0x1c3   : > { %v982_v29 = vsel %vm405_vm0, %v952_v43, %v981_v26 }
 0x1c4   : > { %984 = vst.msk [vmem:[%s235_s13] sm:$0x3] %vm983_vm11, %v982_v29 }
 0x1c5 PF: > { %s16_s18 = sadd.s32 1, %s1153_s18  }
 0x1c6   : > { %p13_p4 = scmp.ge.s32.totalorder %s16_s18, 4  }
 0x1c8   :  { %15 = sbr.rel (!%p13_p4) target bundleno = 1 (0x1), region = 78 }

</bundles_post_ra>
